<compile_context>
chip_gen: v7x
topology: tpu7x:2x2x1
jax: 0.10.0
libtpu: 0.0.40
codegen_flags: <defaults>
</compile_context>

<pallas_src>
import functools
import math

import jax
import jax.numpy as jnp
from jax.experimental import pallas as pl
from jax.experimental.pallas import tpu as pltpu


_LN_EPS = 1e-6  # matches nn.LayerNorm(eps=1e-06) in the PyTorch module


def _layer_norm(x, gamma, beta):
    mean = jnp.mean(x, axis=-1, keepdims=True)
    var = jnp.mean((x - mean) ** 2, axis=-1, keepdims=True)
    return (x - mean) * jax.lax.rsqrt(var + _LN_EPS) * gamma + beta


def encoder_layer_kernel(n_heads, f_chunk,
                         x_ref, mask_ref,
                         wqkv_ref, bqkv_ref, wo_ref, bo_ref,
                         g1_ref, be1_ref,
                         w1_ref, bf1_ref, w2_ref, bf2_ref,
                         g2_ref, be2_ref,
                         out_ref,
                         attn_scratch):
    Bb, S, D = x_ref.shape
    F = w1_ref.shape[1]
    dh = D // n_heads
    M = Bb * S
    scale = 1.0 / math.sqrt(dh)

    # Residual path kept in f32; MXU inputs in bf16.
    x = x_ref[...].reshape(M, D).astype(jnp.float32)          # (M, D)
    x_bf = x.astype(jnp.bfloat16)

    # ---- fused QKV projection: single (M, D) @ (D, 3D) matmul --------------
    qkv = jnp.dot(x_bf, wqkv_ref[...], preferred_element_type=jnp.float32)

    # Bias-add + cast per slice so the full f32 (M, 3D) tensor and the bf16
    # copies are not all live at the same time.  Softmax scale folded into q.
    q = ((qkv[:, 0 * D:1 * D] + bqkv_ref[:, 0 * D:1 * D]) * scale
         ).astype(jnp.bfloat16).reshape(Bb, S, D)
    k = (qkv[:, 1 * D:2 * D] + bqkv_ref[:, 1 * D:2 * D]
         ).astype(jnp.bfloat16).reshape(Bb, S, D)
    v = (qkv[:, 2 * D:3 * D] + bqkv_ref[:, 2 * D:3 * D]
         ).astype(jnp.bfloat16).reshape(Bb, S, D)

    # Mask bias hoisted out of the head loop (1.0 marks a padded key).
    neg_mask = mask_ref[...].astype(jnp.float32) * (-1e9)      # (Bb, 1, S)

    # ---- multi-head attention; each head's output fills its own lane slice --
    # TODO(synk): for production shapes, pad/permute so dh is 128-lane aligned
    # (avoids relayout copies + masked stores per head).
    for h in range(n_heads):
        sl = slice(h * dh, (h + 1) * dh)
        scores = jnp.einsum("bqd,bkd->bqk", q[:, :, sl], k[:, :, sl],
                            preferred_element_type=jnp.float32)   # (Bb, S, S)
        scores = scores + neg_mask                                # bcast over q
        scores = scores - jnp.max(scores, axis=-1, keepdims=True)
        p = jnp.exp(scores)
        p = p * pl.reciprocal(jnp.sum(p, axis=-1, keepdims=True), approx=True)
        o_h = jnp.einsum("bqk,bkd->bqd", p.astype(jnp.bfloat16), v[:, :, sl],
                         preferred_element_type=jnp.float32)      # (Bb, S, dh)
        attn_scratch[:, :, sl] = o_h.astype(jnp.bfloat16)

    # ---- single full-width output projection --------------------------------
    attn_cat = attn_scratch[...].reshape(M, D)                    # already bf16
    attn = jnp.dot(attn_cat, wo_ref[...],
                   preferred_element_type=jnp.float32) + bo_ref[...]
    # dropout_1: identity (inference)
    norm1 = _layer_norm(attn + x, g1_ref[...], be1_ref[...])      # (M, D) f32
    n1_bf = norm1.astype(jnp.bfloat16)

    # ---- FFN, chunked over the hidden dim F ----------------------------------
    ffn = jnp.zeros((M, D), jnp.float32)
    for c0 in range(0, F, f_chunk):
        c1 = min(F, c0 + f_chunk)
        h1 = jnp.dot(n1_bf, w1_ref[:, c0:c1],
                     preferred_element_type=jnp.float32) + bf1_ref[:, c0:c1]
        h1 = jnp.maximum(h1, 0.0)                                  # relu
        ffn = ffn + jnp.dot(h1.astype(jnp.bfloat16), w2_ref[c0:c1, :],
                            preferred_element_type=jnp.float32)
    ffn = ffn + bf2_ref[...]
    # dropout_2: identity (inference)
    out = _layer_norm(ffn + norm1, g2_ref[...], be2_ref[...])
    out_ref[...] = out.reshape(Bb, S, D).astype(out_ref.dtype)


def _chip_info():
    """(device_kind lowercase, vmem_capacity_bytes) with safe fallbacks."""
    try:
        kind = jax.devices()[0].device_kind.lower()
    except Exception:
        kind = ""
    vmem_cap = 64 * 1024 * 1024  # conservative fallback (v7x size)
    try:
        info = pltpu.get_tpu_info()
        cap = getattr(info, "vmem_capacity_bytes", None)
        if cap:
            vmem_cap = int(cap)
    except Exception:
        pass
    return kind, vmem_cap


def _encoder_layer_impl(x, mask, params, n_heads, *, batch_block, f_chunk,
                        single_buffer_weights):
    B, S, D = x.shape
    F = params["w1"].shape[1]
    assert D % n_heads == 0

    kind, vmem_cap = _chip_info()
    is_v5e = ("v5e" in kind) or ("v5 lite" in kind) or ("v5litepod" in kind)
    multi_tc = "v7" in kind  # two TensorCores per chip share the grid

    # Batch block: target MXU rows per grid step (256x256 MXU on v6e/v7x fills
    # one LHS pass at 256 rows; 512 amortizes RHS weight pushes over 2 passes.
    # v5e's 128x128 MXU is already saturated at 256).  Only force >=2 grid
    # steps on multi-TensorCore chips where "parallel" actually shards work.
    rows_target = 256 if is_v5e else 512
    if batch_block is None:
        bb = max(1, min(B, rows_target // max(S, 1)))
        if multi_tc and B >= 2 and B // bb < 2:
            bb = max(1, B // 2)
    else:
        bb = max(1, min(B, batch_block))
    while B % bb:
        bb -= 1
    grid = (B // bb,)
    M = bb * S

    if f_chunk is None:
        f_chunk = 1024 if "v7" in kind else 2048
    fc = min(F, f_chunk)

    # Weights for the MXU as bf16 (halves HBM->VMEM DMA and VMEM residency);
    # biases / layernorm params stay f32.
    wdt = jnp.bfloat16
    w_qkv = jnp.concatenate(
        [params["wq"], params["wk"], params["wv"]], axis=1).astype(wdt)
    b_qkv = jnp.concatenate(
        [params["bq"], params["bk"], params["bv"]], axis=1).astype(jnp.float32)
    wo = params["wo"].astype(wdt)
    w1 = params["w1"].astype(wdt)
    w2 = params["w2"].astype(wdt)

    def wspec(shape):
        # Constant index_map across the grid: a second pipeline buffer is pure
        # VMEM waste, so request single buffering when supported.
        idx = lambda b: (0,) * len(shape)
        if single_buffer_weights:
            return pl.BlockSpec(shape, idx, pipeline_mode=pl.Buffered(1))
        return pl.BlockSpec(shape, idx)

    in_specs = [
        pl.BlockSpec((bb, S, D), lambda b: (b, 0, 0)),   # x
        pl.BlockSpec((bb, 1, S), lambda b: (b, 0, 0)),   # mask
        wspec((D, 3 * D)), wspec((1, 3 * D)),            # fused qkv
        wspec((D, D)), wspec((1, D)),                    # wo, bo
        wspec((1, D)), wspec((1, D)),                    # layernorm 1
        wspec((D, F)), wspec((1, F)),                    # ffn_1
        wspec((F, D)), wspec((1, D)),                    # ffn_2
        wspec((1, D)), wspec((1, D)),                    # layernorm 2
    ]

    # Advisory cost estimate for XLA scheduling around the custom call.
    flops = 2 * B * S * (4 * D * D + 2 * D * F + 2 * S * D)
    transc = B * n_heads * S * S + 2 * B * S
    bytes_accessed = int(
        2 * B * S * D * x.dtype.itemsize                 # x + out
        + B * S * mask.dtype.itemsize                    # mask
        + (D * 3 * D + D * D + 2 * D * F) * 2            # bf16 weights
        + (3 * D + 6 * D + 2 * F) * 4                    # biases / ln params
    )
    cost = pl.CostEstimate(flops=flops, transcendentals=transc,
                           bytes_accessed=bytes_accessed)

    # VMEM budget estimate.  x/out blocks are double-buffered by the pipeline;
    # weights single- or double-buffered depending on the spec above.
    weight_bytes = (D * 3 * D + D * D + 2 * D * F) * 2   # bf16
    small_bytes = (3 * D + 6 * D + 2 * F) * 4
    wb_factor = 1 if single_buffer_weights else 2
    block_bytes = (
        4 * (bb * S * D * x.dtype.itemsize)              # x + out, 2 buffers
        + wb_factor * weight_bytes
        + 2 * small_bytes
        + M * D * 2                                      # bf16 attention scratch
        + 6 * M * max(3 * D, D + fc) * 4                 # live f32 intermediates
    )
    # Request at most ~85% of physical VMEM (and never closer than 8 MiB to
    # it) so the compiler keeps room for its own scratch/semaphores.
    vmem_ceiling = min(vmem_cap - 8 * 1024 * 1024, int(vmem_cap * 0.85))
    vmem_limit = int(max(16 * 1024 * 1024,
                         min(vmem_ceiling,
                             max(32 * 1024 * 1024, 2 * block_bytes))))

    kernel = functools.partial(encoder_layer_kernel, n_heads, fc)
    return pl.pallas_call(
        kernel,
        out_shape=jax.ShapeDtypeStruct((B, S, D), x.dtype),
        grid=grid,
        in_specs=in_specs,
        out_specs=pl.BlockSpec((bb, S, D), lambda b: (b, 0, 0)),
        scratch_shapes=[pltpu.VMEM((bb, S, D), jnp.bfloat16)],
        compiler_params=pltpu.CompilerParams(
            dimension_semantics=("parallel",),
            vmem_limit_bytes=vmem_limit),
        cost_estimate=cost,
    )(x, mask, w_qkv, b_qkv, wo, params["bo"],
      params["g1"], params["be1"],
      w1, params["bf1"], w2, params["bf2"],
      params["g2"], params["be2"])


def encoder_layer(x, mask, params, n_heads, *, batch_block=None, f_chunk=None):
    # Prefer single-buffered weight specs (pipeline_mode=pl.Buffered(1)); fall
    # back to default double-buffering if this JAX/Mosaic build rejects it.
    try:
        return _encoder_layer_impl(x, mask, params, n_heads,
                                   batch_block=batch_block, f_chunk=f_chunk,
                                   single_buffer_weights=True)
    except Exception:
        return _encoder_layer_impl(x, mask, params, n_heads,
                                   batch_block=batch_block, f_chunk=f_chunk,
                                   single_buffer_weights=False)


def encoder_layer_ref(x, mask, params, n_heads):
    """Pure-JAX (f32) reference for correctness checking."""
    B, S, D = x.shape
    dh = D // n_heads
    q = x @ params["wq"] + params["bq"]
    k = x @ params["wk"] + params["bk"]
    v = x @ params["wv"] + params["bv"]

    def split(t):  # (B,S,D) -> (B,H,S,dh)
        return t.reshape(B, S, n_heads, dh).transpose(0, 2, 1, 3)

    qh, kh, vh = split(q), split(k), split(v)
    scores = jnp.einsum("bhqd,bhkd->bhqk", qh, kh) / math.sqrt(dh)
    scores = scores + mask[:, None, :, :] * (-1e9)
    p = jax.nn.softmax(scores, axis=-1)
    oh = jnp.einsum("bhqk,bhkd->bhqd", p, vh)
    attn = oh.transpose(0, 2, 1, 3).reshape(B, S, D) @ params["wo"] + params["bo"]

    def ln(t, g, b):
        m = jnp.mean(t, axis=-1, keepdims=True)
        var = jnp.mean((t - m) ** 2, axis=-1, keepdims=True)
        return (t - m) * jax.lax.rsqrt(var + _LN_EPS) * g + b

    norm1 = ln(attn + x, params["g1"], params["be1"])
    h1 = jax.nn.relu(norm1 @ params["w1"] + params["bf1"])
    ffn = h1 @ params["w2"] + params["bf2"]
    return ln(ffn + norm1, params["g2"], params["be2"])


def init_params(key, d_model, ffn_units):
    keys = jax.random.split(key, 10)
    s_d = 1.0 / math.sqrt(d_model)
    s_f = 1.0 / math.sqrt(ffn_units)
    return {
        "wq": jax.random.normal(keys[0], (d_model, d_model), jnp.float32) * s_d,
        "bq": jnp.zeros((1, d_model), jnp.float32),
        "wk": jax.random.normal(keys[1], (d_model, d_model), jnp.float32) * s_d,
        "bk": jnp.zeros((1, d_model), jnp.float32),
        "wv": jax.random.normal(keys[2], (d_model, d_model), jnp.float32) * s_d,
        "bv": jnp.zeros((1, d_model), jnp.float32),
        "wo": jax.random.normal(keys[3], (d_model, d_model), jnp.float32) * s_d,
        "bo": jax.random.normal(keys[4], (1, d_model), jnp.float32) * 0.01,
        "g1": jnp.ones((1, d_model), jnp.float32),
        "be1": jnp.zeros((1, d_model), jnp.float32),
        "w1": jax.random.normal(keys[5], (d_model, ffn_units), jnp.float32) * s_d,
        "bf1": jax.random.normal(keys[6], (1, ffn_units), jnp.float32) * 0.01,
        "w2": jax.random.normal(keys[7], (ffn_units, d_model), jnp.float32) * s_f,
        "bf2": jax.random.normal(keys[8], (1, d_model), jnp.float32) * 0.01,
        "g2": jnp.ones((1, d_model), jnp.float32),
        "be2": jnp.zeros((1, d_model), jnp.float32),
    }


if __name__ == "__main__":
    B, S, D, H, F = 2, 8, 32, 4, 64

    key = jax.random.PRNGKey(0)
    kx, kp = jax.random.split(key)
    x = jax.random.normal(kx, (B, S, D), jnp.float32)

    # Padding mask: 1.0 -> position is masked out. Last two keys of batch 1 padded.
    mask = jnp.zeros((B, 1, S), jnp.float32).at[1, 0, -2:].set(1.0)

    params = init_params(kp, D, F)

    out = encoder_layer(x, mask, params, H)
    out = jax.block_until_ready(out)

    ref = encoder_layer_ref(x, mask, params, H)
    assert out.shape == (B, S, D)
    err = float(jnp.max(jnp.abs(out - ref)))
    # bf16 MXU inputs (f32 accumulation) -> looser tolerance than pure f32.
    assert err < 5e-2, f"mismatch vs reference: max abs err {err}"

    print("KERNEL_OK")
</pallas_src>

<mosaic_0001>
module attributes {stable_mosaic.version = 11 : i64} {
  func.func @encoder_layer_kernel(%arg0: i32, %arg1: memref<2x8x32xf32, #tpu.memory_space<vmem>>, %arg2: memref<2x1x8xf32, #tpu.memory_space<vmem>>, %arg3: memref<32x96xbf16, #tpu.memory_space<vmem>>, %arg4: memref<1x96xf32, #tpu.memory_space<vmem>>, %arg5: memref<32x32xbf16, #tpu.memory_space<vmem>>, %arg6: memref<1x32xf32, #tpu.memory_space<vmem>>, %arg7: memref<1x32xf32, #tpu.memory_space<vmem>>, %arg8: memref<1x32xf32, #tpu.memory_space<vmem>>, %arg9: memref<32x64xbf16, #tpu.memory_space<vmem>>, %arg10: memref<1x64xf32, #tpu.memory_space<vmem>>, %arg11: memref<64x32xbf16, #tpu.memory_space<vmem>>, %arg12: memref<1x32xf32, #tpu.memory_space<vmem>>, %arg13: memref<1x32xf32, #tpu.memory_space<vmem>>, %arg14: memref<1x32xf32, #tpu.memory_space<vmem>>, %arg15: memref<2x8x32xf32, #tpu.memory_space<vmem>>, %arg16: memref<2x8x32xbf16, #tpu.memory_space<vmem>>) attributes {dimension_semantics = [#tpu.dimension_semantics<parallel>], iteration_bounds = array<i64: 1>, scalar_prefetch = 0 : i64, scratch_operands = 1 : i64, tpu.core_type = #tpu.core_type<tc>, window_params = [{transform_indices = @transform_0, window_bounds = array<i64: 2, 8, 32>}, {transform_indices = @transform_1, window_bounds = array<i64: 2, 1, 8>}, {pipeline_mode = #tpu.pipeline_mode<synchronous>, transform_indices = @transform_2, window_bounds = array<i64: 32, 96>}, {pipeline_mode = #tpu.pipeline_mode<synchronous>, transform_indices = @transform_3, window_bounds = array<i64: 1, 96>}, {pipeline_mode = #tpu.pipeline_mode<synchronous>, transform_indices = @transform_4, window_bounds = array<i64: 32, 32>}, {pipeline_mode = #tpu.pipeline_mode<synchronous>, transform_indices = @transform_5, window_bounds = array<i64: 1, 32>}, {pipeline_mode = #tpu.pipeline_mode<synchronous>, transform_indices = @transform_6, window_bounds = array<i64: 1, 32>}, {pipeline_mode = #tpu.pipeline_mode<synchronous>, transform_indices = @transform_7, window_bounds = array<i64: 1, 32>}, {pipeline_mode = #tpu.pipeline_mode<synchronous>, transform_indices = @transform_8, window_bounds = array<i64: 32, 64>}, {pipeline_mode = #tpu.pipeline_mode<synchronous>, transform_indices = @transform_9, window_bounds = array<i64: 1, 64>}, {pipeline_mode = #tpu.pipeline_mode<synchronous>, transform_indices = @transform_10, window_bounds = array<i64: 64, 32>}, {pipeline_mode = #tpu.pipeline_mode<synchronous>, transform_indices = @transform_11, window_bounds = array<i64: 1, 32>}, {pipeline_mode = #tpu.pipeline_mode<synchronous>, transform_indices = @transform_12, window_bounds = array<i64: 1, 32>}, {pipeline_mode = #tpu.pipeline_mode<synchronous>, transform_indices = @transform_13, window_bounds = array<i64: 1, 32>}, {transform_indices = @transform_14, window_bounds = array<i64: 2, 8, 32>}]} {
    %c0 = arith.constant 0 : index
    %c0_0 = arith.constant 0 : index
    %c0_1 = arith.constant 0 : index
    %0 = vector.load %arg1[%c0, %c0_0, %c0_1] : memref<2x8x32xf32, #tpu.memory_space<vmem>>, vector<2x8x32xf32>
    %1 = vector.shape_cast %0 : vector<2x8x32xf32> to vector<16x32xf32>
    %2 = arith.truncf %1 : vector<16x32xf32> to vector<16x32xbf16>
    %c0_2 = arith.constant 0 : index
    %c0_3 = arith.constant 0 : index
    %3 = vector.load %arg3[%c0_2, %c0_3] : memref<32x96xbf16, #tpu.memory_space<vmem>>, vector<32x96xbf16>
    %cst = arith.constant dense<0.000000e+00> : vector<16x96xf32>
    %4 = tpu.matmul %2, %3, %cst {dimension_numbers = #tpu.dot_dimension_numbers<[1], [0], [0], [1], [0, 0, 1, 1], [], []>} : vector<16x32xbf16>, vector<32x96xbf16>, vector<16x96xf32> -> vector<16x96xf32>
    %5 = vector.extract_strided_slice %4 {offsets = [0, 0], sizes = [16, 32], strides = [1, 1]} : vector<16x96xf32> to vector<16x32xf32>
    %c0_4 = arith.constant 0 : index
    %c0_5 = arith.constant 0 : index
    %6 = vector.load %arg4[%c0_4, %c0_5] : memref<1x96xf32, #tpu.memory_space<vmem>>, vector<1x32xf32>
    %7 = vector.broadcast %6 : vector<1x32xf32> to vector<16x32xf32>
    %8 = arith.addf %5, %7 : vector<16x32xf32>
    %cst_6 = arith.constant 0.353553385 : f32
    %9 = vector.broadcast %cst_6 : f32 to vector<16x32xf32>
    %10 = arith.mulf %8, %9 : vector<16x32xf32>
    %11 = arith.truncf %10 : vector<16x32xf32> to vector<16x32xbf16>
    %12 = vector.shape_cast %11 : vector<16x32xbf16> to vector<2x8x32xbf16>
    %13 = vector.extract_strided_slice %4 {offsets = [0, 32], sizes = [16, 32], strides = [1, 1]} : vector<16x96xf32> to vector<16x32xf32>
    %c0_7 = arith.constant 0 : index
    %c32 = arith.constant 32 : index
    %14 = vector.load %arg4[%c0_7, %c32] : memref<1x96xf32, #tpu.memory_space<vmem>>, vector<1x32xf32>
    %15 = vector.broadcast %14 : vector<1x32xf32> to vector<16x32xf32>
    %16 = arith.addf %13, %15 : vector<16x32xf32>
    %17 = arith.truncf %16 : vector<16x32xf32> to vector<16x32xbf16>
    %18 = vector.shape_cast %17 : vector<16x32xbf16> to vector<2x8x32xbf16>
    %19 = vector.extract_strided_slice %4 {offsets = [0, 64], sizes = [16, 32], strides = [1, 1]} : vector<16x96xf32> to vector<16x32xf32>
    %c0_8 = arith.constant 0 : index
    %c64 = arith.constant 64 : index
    %20 = vector.load %arg4[%c0_8, %c64] : memref<1x96xf32, #tpu.memory_space<vmem>>, vector<1x32xf32>
    %21 = vector.broadcast %20 : vector<1x32xf32> to vector<16x32xf32>
    %22 = arith.addf %19, %21 : vector<16x32xf32>
    %23 = arith.truncf %22 : vector<16x32xf32> to vector<16x32xbf16>
    %24 = vector.shape_cast %23 : vector<16x32xbf16> to vector<2x8x32xbf16>
    %c0_9 = arith.constant 0 : index
    %c0_10 = arith.constant 0 : index
    %c0_11 = arith.constant 0 : index
    %25 = vector.load %arg2[%c0_9, %c0_10, %c0_11] : memref<2x1x8xf32, #tpu.memory_space<vmem>>, vector<2x1x8xf32>
    %cst_12 = arith.constant -1.000000e+09 : f32
    %26 = vector.broadcast %cst_12 : f32 to vector<2x1x8xf32>
    %27 = arith.mulf %25, %26 : vector<2x1x8xf32>
    %28 = vector.extract_strided_slice %12 {offsets = [0, 0, 0], sizes = [2, 8, 8], strides = [1, 1, 1]} : vector<2x8x32xbf16> to vector<2x8x8xbf16>
    %29 = vector.extract_strided_slice %18 {offsets = [0, 0, 0], sizes = [2, 8, 8], strides = [1, 1, 1]} : vector<2x8x32xbf16> to vector<2x8x8xbf16>
    "tpu.trace_start"() <{level = 10 : i32, message = "bqd,bkd->bqk"}> : () -> ()
    %cst_13 = arith.constant dense<0.000000e+00> : vector<2x8x8xf32>
    %30 = tpu.matmul %28, %29, %cst_13 {dimension_numbers = #tpu.dot_dimension_numbers<[2], [2], [1], [1], [0, 0, 0, 1, 1, 1], [0], [0]>} : vector<2x8x8xbf16>, vector<2x8x8xbf16>, vector<2x8x8xf32> -> vector<2x8x8xf32>
    "tpu.trace_stop"() : () -> ()
    %31 = vector.broadcast %27 : vector<2x1x8xf32> to vector<2x8x8xf32>
    %32 = arith.addf %30, %31 : vector<2x8x8xf32>
    %cst_14 = arith.constant dense<0xFF800000> : vector<2x8xf32>
    %33 = vector.multi_reduction <maximumf>, %32, %cst_14 [2] : vector<2x8x8xf32> to vector<2x8xf32>
    %34 = vector.shape_cast %33 : vector<2x8xf32> to vector<2x8x1xf32>
    %35 = vector.broadcast %34 : vector<2x8x1xf32> to vector<2x8x8xf32>
    %36 = arith.subf %32, %35 : vector<2x8x8xf32>
    %37 = math.exp %36 : vector<2x8x8xf32>
    %cst_15 = arith.constant dense<0.000000e+00> : vector<2x8xf32>
    %38 = vector.multi_reduction <add>, %37, %cst_15 [2] : vector<2x8x8xf32> to vector<2x8xf32>
    %39 = vector.shape_cast %38 : vector<2x8xf32> to vector<2x8x1xf32>
    %40 = tpu.reciprocal %39 {approx = true} : vector<2x8x1xf32> -> vector<2x8x1xf32>
    %41 = vector.broadcast %40 : vector<2x8x1xf32> to vector<2x8x8xf32>
    %42 = arith.mulf %37, %41 : vector<2x8x8xf32>
    %43 = arith.truncf %42 : vector<2x8x8xf32> to vector<2x8x8xbf16>
    %44 = vector.extract_strided_slice %24 {offsets = [0, 0, 0], sizes = [2, 8, 8], strides = [1, 1, 1]} : vector<2x8x32xbf16> to vector<2x8x8xbf16>
    "tpu.trace_start"() <{level = 10 : i32, message = "bqk,bkd->bqd"}> : () -> ()
    %cst_16 = arith.constant dense<0.000000e+00> : vector<2x8x8xf32>
    %45 = tpu.matmul %43, %44, %cst_16 {dimension_numbers = #tpu.dot_dimension_numbers<[2], [1], [1], [2], [0, 0, 0, 1, 1, 2], [0], [0]>} : vector<2x8x8xbf16>, vector<2x8x8xbf16>, vector<2x8x8xf32> -> vector<2x8x8xf32>
    "tpu.trace_stop"() : () -> ()
    %46 = arith.truncf %45 : vector<2x8x8xf32> to vector<2x8x8xbf16>
    %c0_17 = arith.constant 0 : index
    %c0_18 = arith.constant 0 : index
    %c0_19 = arith.constant 0 : index
    %47 = vector.load %arg16[%c0_17, %c0_18, %c0_19] : memref<2x8x32xbf16, #tpu.memory_space<vmem>>, vector<2x8x8xbf16>
    tpu.vector_store %arg16[%c0_17, %c0_18, %c0_19], %46 {strides = array<i32>} : memref<2x8x32xbf16, #tpu.memory_space<vmem>>, vector<2x8x8xbf16>,
    %48 = vector.extract_strided_slice %12 {offsets = [0, 0, 8], sizes = [2, 8, 8], strides = [1, 1, 1]} : vector<2x8x32xbf16> to vector<2x8x8xbf16>
    %49 = vector.extract_strided_slice %18 {offsets = [0, 0, 8], sizes = [2, 8, 8], strides = [1, 1, 1]} : vector<2x8x32xbf16> to vector<2x8x8xbf16>
    "tpu.trace_start"() <{level = 10 : i32, message = "bqd,bkd->bqk"}> : () -> ()
    %cst_20 = arith.constant dense<0.000000e+00> : vector<2x8x8xf32>
    %50 = tpu.matmul %48, %49, %cst_20 {dimension_numbers = #tpu.dot_dimension_numbers<[2], [2], [1], [1], [0, 0, 0, 1, 1, 1], [0], [0]>} : vector<2x8x8xbf16>, vector<2x8x8xbf16>, vector<2x8x8xf32> -> vector<2x8x8xf32>
    "tpu.trace_stop"() : () -> ()
    %51 = vector.broadcast %27 : vector<2x1x8xf32> to vector<2x8x8xf32>
    %52 = arith.addf %50, %51 : vector<2x8x8xf32>
    %cst_21 = arith.constant dense<0xFF800000> : vector<2x8xf32>
    %53 = vector.multi_reduction <maximumf>, %52, %cst_21 [2] : vector<2x8x8xf32> to vector<2x8xf32>
    %54 = vector.shape_cast %53 : vector<2x8xf32> to vector<2x8x1xf32>
    %55 = vector.broadcast %54 : vector<2x8x1xf32> to vector<2x8x8xf32>
    %56 = arith.subf %52, %55 : vector<2x8x8xf32>
    %57 = math.exp %56 : vector<2x8x8xf32>
    %cst_22 = arith.constant dense<0.000000e+00> : vector<2x8xf32>
    %58 = vector.multi_reduction <add>, %57, %cst_22 [2] : vector<2x8x8xf32> to vector<2x8xf32>
    %59 = vector.shape_cast %58 : vector<2x8xf32> to vector<2x8x1xf32>
    %60 = tpu.reciprocal %59 {approx = true} : vector<2x8x1xf32> -> vector<2x8x1xf32>
    %61 = vector.broadcast %60 : vector<2x8x1xf32> to vector<2x8x8xf32>
    %62 = arith.mulf %57, %61 : vector<2x8x8xf32>
    %63 = arith.truncf %62 : vector<2x8x8xf32> to vector<2x8x8xbf16>
    %64 = vector.extract_strided_slice %24 {offsets = [0, 0, 8], sizes = [2, 8, 8], strides = [1, 1, 1]} : vector<2x8x32xbf16> to vector<2x8x8xbf16>
    "tpu.trace_start"() <{level = 10 : i32, message = "bqk,bkd->bqd"}> : () -> ()
    %cst_23 = arith.constant dense<0.000000e+00> : vector<2x8x8xf32>
    %65 = tpu.matmul %63, %64, %cst_23 {dimension_numbers = #tpu.dot_dimension_numbers<[2], [1], [1], [2], [0, 0, 0, 1, 1, 2], [0], [0]>} : vector<2x8x8xbf16>, vector<2x8x8xbf16>, vector<2x8x8xf32> -> vector<2x8x8xf32>
    "tpu.trace_stop"() : () -> ()
    %66 = arith.truncf %65 : vector<2x8x8xf32> to vector<2x8x8xbf16>
    %c0_24 = arith.constant 0 : index
    %c0_25 = arith.constant 0 : index
    %c8 = arith.constant 8 : index
    %67 = vector.load %arg16[%c0_24, %c0_25, %c8] : memref<2x8x32xbf16, #tpu.memory_space<vmem>>, vector<2x8x8xbf16>
    tpu.vector_store %arg16[%c0_24, %c0_25, %c8], %66 {strides = array<i32>} : memref<2x8x32xbf16, #tpu.memory_space<vmem>>, vector<2x8x8xbf16>,
    %68 = vector.extract_strided_slice %12 {offsets = [0, 0, 16], sizes = [2, 8, 8], strides = [1, 1, 1]} : vector<2x8x32xbf16> to vector<2x8x8xbf16>
    %69 = vector.extract_strided_slice %18 {offsets = [0, 0, 16], sizes = [2, 8, 8], strides = [1, 1, 1]} : vector<2x8x32xbf16> to vector<2x8x8xbf16>
    "tpu.trace_start"() <{level = 10 : i32, message = "bqd,bkd->bqk"}> : () -> ()
    %cst_26 = arith.constant dense<0.000000e+00> : vector<2x8x8xf32>
    %70 = tpu.matmul %68, %69, %cst_26 {dimension_numbers = #tpu.dot_dimension_numbers<[2], [2], [1], [1], [0, 0, 0, 1, 1, 1], [0], [0]>} : vector<2x8x8xbf16>, vector<2x8x8xbf16>, vector<2x8x8xf32> -> vector<2x8x8xf32>
    "tpu.trace_stop"() : () -> ()
    %71 = vector.broadcast %27 : vector<2x1x8xf32> to vector<2x8x8xf32>
    %72 = arith.addf %70, %71 : vector<2x8x8xf32>
    %cst_27 = arith.constant dense<0xFF800000> : vector<2x8xf32>
    %73 = vector.multi_reduction <maximumf>, %72, %cst_27 [2] : vector<2x8x8xf32> to vector<2x8xf32>
    %74 = vector.shape_cast %73 : vector<2x8xf32> to vector<2x8x1xf32>
    %75 = vector.broadcast %74 : vector<2x8x1xf32> to vector<2x8x8xf32>
    %76 = arith.subf %72, %75 : vector<2x8x8xf32>
    %77 = math.exp %76 : vector<2x8x8xf32>
    %cst_28 = arith.constant dense<0.000000e+00> : vector<2x8xf32>
    %78 = vector.multi_reduction <add>, %77, %cst_28 [2] : vector<2x8x8xf32> to vector<2x8xf32>
    %79 = vector.shape_cast %78 : vector<2x8xf32> to vector<2x8x1xf32>
    %80 = tpu.reciprocal %79 {approx = true} : vector<2x8x1xf32> -> vector<2x8x1xf32>
    %81 = vector.broadcast %80 : vector<2x8x1xf32> to vector<2x8x8xf32>
    %82 = arith.mulf %77, %81 : vector<2x8x8xf32>
    %83 = arith.truncf %82 : vector<2x8x8xf32> to vector<2x8x8xbf16>
    %84 = vector.extract_strided_slice %24 {offsets = [0, 0, 16], sizes = [2, 8, 8], strides = [1, 1, 1]} : vector<2x8x32xbf16> to vector<2x8x8xbf16>
    "tpu.trace_start"() <{level = 10 : i32, message = "bqk,bkd->bqd"}> : () -> ()
    %cst_29 = arith.constant dense<0.000000e+00> : vector<2x8x8xf32>
    %85 = tpu.matmul %83, %84, %cst_29 {dimension_numbers = #tpu.dot_dimension_numbers<[2], [1], [1], [2], [0, 0, 0, 1, 1, 2], [0], [0]>} : vector<2x8x8xbf16>, vector<2x8x8xbf16>, vector<2x8x8xf32> -> vector<2x8x8xf32>
    "tpu.trace_stop"() : () -> ()
    %86 = arith.truncf %85 : vector<2x8x8xf32> to vector<2x8x8xbf16>
    %c0_30 = arith.constant 0 : index
    %c0_31 = arith.constant 0 : index
    %c16 = arith.constant 16 : index
    %87 = vector.load %arg16[%c0_30, %c0_31, %c16] : memref<2x8x32xbf16, #tpu.memory_space<vmem>>, vector<2x8x8xbf16>
    tpu.vector_store %arg16[%c0_30, %c0_31, %c16], %86 {strides = array<i32>} : memref<2x8x32xbf16, #tpu.memory_space<vmem>>, vector<2x8x8xbf16>,
    %88 = vector.extract_strided_slice %12 {offsets = [0, 0, 24], sizes = [2, 8, 8], strides = [1, 1, 1]} : vector<2x8x32xbf16> to vector<2x8x8xbf16>
    %89 = vector.extract_strided_slice %18 {offsets = [0, 0, 24], sizes = [2, 8, 8], strides = [1, 1, 1]} : vector<2x8x32xbf16> to vector<2x8x8xbf16>
    "tpu.trace_start"() <{level = 10 : i32, message = "bqd,bkd->bqk"}> : () -> ()
    %cst_32 = arith.constant dense<0.000000e+00> : vector<2x8x8xf32>
    %90 = tpu.matmul %88, %89, %cst_32 {dimension_numbers = #tpu.dot_dimension_numbers<[2], [2], [1], [1], [0, 0, 0, 1, 1, 1], [0], [0]>} : vector<2x8x8xbf16>, vector<2x8x8xbf16>, vector<2x8x8xf32> -> vector<2x8x8xf32>
    "tpu.trace_stop"() : () -> ()
    %91 = vector.broadcast %27 : vector<2x1x8xf32> to vector<2x8x8xf32>
    %92 = arith.addf %90, %91 : vector<2x8x8xf32>
    %cst_33 = arith.constant dense<0xFF800000> : vector<2x8xf32>
    %93 = vector.multi_reduction <maximumf>, %92, %cst_33 [2] : vector<2x8x8xf32> to vector<2x8xf32>
    %94 = vector.shape_cast %93 : vector<2x8xf32> to vector<2x8x1xf32>
    %95 = vector.broadcast %94 : vector<2x8x1xf32> to vector<2x8x8xf32>
    %96 = arith.subf %92, %95 : vector<2x8x8xf32>
    %97 = math.exp %96 : vector<2x8x8xf32>
    %cst_34 = arith.constant dense<0.000000e+00> : vector<2x8xf32>
    %98 = vector.multi_reduction <add>, %97, %cst_34 [2] : vector<2x8x8xf32> to vector<2x8xf32>
    %99 = vector.shape_cast %98 : vector<2x8xf32> to vector<2x8x1xf32>
    %100 = tpu.reciprocal %99 {approx = true} : vector<2x8x1xf32> -> vector<2x8x1xf32>
    %101 = vector.broadcast %100 : vector<2x8x1xf32> to vector<2x8x8xf32>
    %102 = arith.mulf %97, %101 : vector<2x8x8xf32>
    %103 = arith.truncf %102 : vector<2x8x8xf32> to vector<2x8x8xbf16>
    %104 = vector.extract_strided_slice %24 {offsets = [0, 0, 24], sizes = [2, 8, 8], strides = [1, 1, 1]} : vector<2x8x32xbf16> to vector<2x8x8xbf16>
    "tpu.trace_start"() <{level = 10 : i32, message = "bqk,bkd->bqd"}> : () -> ()
    %cst_35 = arith.constant dense<0.000000e+00> : vector<2x8x8xf32>
    %105 = tpu.matmul %103, %104, %cst_35 {dimension_numbers = #tpu.dot_dimension_numbers<[2], [1], [1], [2], [0, 0, 0, 1, 1, 2], [0], [0]>} : vector<2x8x8xbf16>, vector<2x8x8xbf16>, vector<2x8x8xf32> -> vector<2x8x8xf32>
    "tpu.trace_stop"() : () -> ()
    %106 = arith.truncf %105 : vector<2x8x8xf32> to vector<2x8x8xbf16>
    %c0_36 = arith.constant 0 : index
    %c0_37 = arith.constant 0 : index
    %c24 = arith.constant 24 : index
    %107 = vector.load %arg16[%c0_36, %c0_37, %c24] : memref<2x8x32xbf16, #tpu.memory_space<vmem>>, vector<2x8x8xbf16>
    tpu.vector_store %arg16[%c0_36, %c0_37, %c24], %106 {strides = array<i32>} : memref<2x8x32xbf16, #tpu.memory_space<vmem>>, vector<2x8x8xbf16>,
    %c0_38 = arith.constant 0 : index
    %c0_39 = arith.constant 0 : index
    %c0_40 = arith.constant 0 : index
    %108 = vector.load %arg16[%c0_38, %c0_39, %c0_40] : memref<2x8x32xbf16, #tpu.memory_space<vmem>>, vector<2x8x32xbf16>
    %109 = vector.shape_cast %108 : vector<2x8x32xbf16> to vector<16x32xbf16>
    %c0_41 = arith.constant 0 : index
    %c0_42 = arith.constant 0 : index
    %110 = vector.load %arg5[%c0_41, %c0_42] : memref<32x32xbf16, #tpu.memory_space<vmem>>, vector<32x32xbf16>
    %cst_43 = arith.constant dense<0.000000e+00> : vector<16x32xf32>
    %111 = tpu.matmul %109, %110, %cst_43 {dimension_numbers = #tpu.dot_dimension_numbers<[1], [0], [0], [1], [0, 0, 1, 1], [], []>} : vector<16x32xbf16>, vector<32x32xbf16>, vector<16x32xf32> -> vector<16x32xf32>
    %c0_44 = arith.constant 0 : index
    %c0_45 = arith.constant 0 : index
    %112 = vector.load %arg6[%c0_44, %c0_45] : memref<1x32xf32, #tpu.memory_space<vmem>>, vector<1x32xf32>
    %113 = vector.broadcast %112 : vector<1x32xf32> to vector<16x32xf32>
    %114 = arith.addf %111, %113 : vector<16x32xf32>
    %115 = arith.addf %114, %1 : vector<16x32xf32>
    %c0_46 = arith.constant 0 : index
    %c0_47 = arith.constant 0 : index
    %116 = vector.load %arg7[%c0_46, %c0_47] : memref<1x32xf32, #tpu.memory_space<vmem>>, vector<1x32xf32>
    %c0_48 = arith.constant 0 : index
    %c0_49 = arith.constant 0 : index
    %117 = vector.load %arg8[%c0_48, %c0_49] : memref<1x32xf32, #tpu.memory_space<vmem>>, vector<1x32xf32>
    %cst_50 = arith.constant dense<0.000000e+00> : vector<16xf32>
    %118 = vector.multi_reduction <add>, %115, %cst_50 [1] : vector<16x32xf32> to vector<16xf32>
    %119 = vector.shape_cast %118 : vector<16xf32> to vector<16x1xf32>
    %cst_51 = arith.constant 3.200000e+01 : f32
    %120 = vector.broadcast %cst_51 : f32 to vector<16x1xf32>
    %121 = arith.divf %119, %120 : vector<16x1xf32>
    %122 = vector.broadcast %121 : vector<16x1xf32> to vector<16x32xf32>
    %123 = arith.subf %115, %122 : vector<16x32xf32>
    %124 = arith.mulf %123, %123 : vector<16x32xf32>
    %cst_52 = arith.constant dense<0.000000e+00> : vector<16xf32>
    %125 = vector.multi_reduction <add>, %124, %cst_52 [1] : vector<16x32xf32> to vector<16xf32>
    %126 = vector.shape_cast %125 : vector<16xf32> to vector<16x1xf32>
    %cst_53 = arith.constant 3.200000e+01 : f32
    %127 = vector.broadcast %cst_53 : f32 to vector<16x1xf32>
    %128 = arith.divf %126, %127 : vector<16x1xf32>
    %129 = vector.broadcast %121 : vector<16x1xf32> to vector<16x32xf32>
    %130 = arith.subf %115, %129 : vector<16x32xf32>
    %cst_54 = arith.constant 9.99999997E-7 : f32
    %131 = vector.broadcast %cst_54 : f32 to vector<16x1xf32>
    %132 = arith.addf %128, %131 : vector<16x1xf32>
    %133 = math.rsqrt %132 : vector<16x1xf32>
    %134 = vector.broadcast %133 : vector<16x1xf32> to vector<16x32xf32>
    %135 = arith.mulf %130, %134 : vector<16x32xf32>
    %136 = vector.broadcast %116 : vector<1x32xf32> to vector<16x32xf32>
    %137 = arith.mulf %135, %136 : vector<16x32xf32>
    %138 = vector.broadcast %117 : vector<1x32xf32> to vector<16x32xf32>
    %139 = arith.addf %137, %138 : vector<16x32xf32>
    %140 = arith.truncf %139 : vector<16x32xf32> to vector<16x32xbf16>
    %cst_55 = arith.constant 0.000000e+00 : f32
    %141 = vector.broadcast %cst_55 : f32 to vector<16x32xf32>
    %c0_56 = arith.constant 0 : index
    %c0_57 = arith.constant 0 : index
    %142 = vector.load %arg9[%c0_56, %c0_57] : memref<32x64xbf16, #tpu.memory_space<vmem>>, vector<32x64xbf16>
    %cst_58 = arith.constant dense<0.000000e+00> : vector<16x64xf32>
    %143 = tpu.matmul %140, %142, %cst_58 {dimension_numbers = #tpu.dot_dimension_numbers<[1], [0], [0], [1], [0, 0, 1, 1], [], []>} : vector<16x32xbf16>, vector<32x64xbf16>, vector<16x64xf32> -> vector<16x64xf32>
    %c0_59 = arith.constant 0 : index
    %c0_60 = arith.constant 0 : index
    %144 = vector.load %arg10[%c0_59, %c0_60] : memref<1x64xf32, #tpu.memory_space<vmem>>, vector<1x64xf32>
    %145 = vector.broadcast %144 : vector<1x64xf32> to vector<16x64xf32>
    %146 = arith.addf %143, %145 : vector<16x64xf32>
    %cst_61 = arith.constant 0.000000e+00 : f32
    %147 = vector.broadcast %cst_61 : f32 to vector<16x64xf32>
    %148 = arith.maximumf %146, %147 : vector<16x64xf32>
    %149 = arith.truncf %148 : vector<16x64xf32> to vector<16x64xbf16>
    %c0_62 = arith.constant 0 : index
    %c0_63 = arith.constant 0 : index
    %150 = vector.load %arg11[%c0_62, %c0_63] : memref<64x32xbf16, #tpu.memory_space<vmem>>, vector<64x32xbf16>
    %cst_64 = arith.constant dense<0.000000e+00> : vector<16x32xf32>
    %151 = tpu.matmul %149, %150, %cst_64 {dimension_numbers = #tpu.dot_dimension_numbers<[1], [0], [0], [1], [0, 0, 1, 1], [], []>} : vector<16x64xbf16>, vector<64x32xbf16>, vector<16x32xf32> -> vector<16x32xf32>
    %152 = arith.addf %141, %151 : vector<16x32xf32>
    %c0_65 = arith.constant 0 : index
    %c0_66 = arith.constant 0 : index
    %153 = vector.load %arg12[%c0_65, %c0_66] : memref<1x32xf32, #tpu.memory_space<vmem>>, vector<1x32xf32>
    %154 = vector.broadcast %153 : vector<1x32xf32> to vector<16x32xf32>
    %155 = arith.addf %152, %154 : vector<16x32xf32>
    %156 = arith.addf %155, %139 : vector<16x32xf32>
    %c0_67 = arith.constant 0 : index
    %c0_68 = arith.constant 0 : index
    %157 = vector.load %arg13[%c0_67, %c0_68] : memref<1x32xf32, #tpu.memory_space<vmem>>, vector<1x32xf32>
    %c0_69 = arith.constant 0 : index
    %c0_70 = arith.constant 0 : index
    %158 = vector.load %arg14[%c0_69, %c0_70] : memref<1x32xf32, #tpu.memory_space<vmem>>, vector<1x32xf32>
    %cst_71 = arith.constant dense<0.000000e+00> : vector<16xf32>
    %159 = vector.multi_reduction <add>, %156, %cst_71 [1] : vector<16x32xf32> to vector<16xf32>
    %160 = vector.shape_cast %159 : vector<16xf32> to vector<16x1xf32>
    %cst_72 = arith.constant 3.200000e+01 : f32
    %161 = vector.broadcast %cst_72 : f32 to vector<16x1xf32>
    %162 = arith.divf %160, %161 : vector<16x1xf32>
    %163 = vector.broadcast %162 : vector<16x1xf32> to vector<16x32xf32>
    %164 = arith.subf %156, %163 : vector<16x32xf32>
    %165 = arith.mulf %164, %164 : vector<16x32xf32>
    %cst_73 = arith.constant dense<0.000000e+00> : vector<16xf32>
    %166 = vector.multi_reduction <add>, %165, %cst_73 [1] : vector<16x32xf32> to vector<16xf32>
    %167 = vector.shape_cast %166 : vector<16xf32> to vector<16x1xf32>
    %cst_74 = arith.constant 3.200000e+01 : f32
    %168 = vector.broadcast %cst_74 : f32 to vector<16x1xf32>
    %169 = arith.divf %167, %168 : vector<16x1xf32>
    %170 = vector.broadcast %162 : vector<16x1xf32> to vector<16x32xf32>
    %171 = arith.subf %156, %170 : vector<16x32xf32>
    %cst_75 = arith.constant 9.99999997E-7 : f32
    %172 = vector.broadcast %cst_75 : f32 to vector<16x1xf32>
    %173 = arith.addf %169, %172 : vector<16x1xf32>
    %174 = math.rsqrt %173 : vector<16x1xf32>
    %175 = vector.broadcast %174 : vector<16x1xf32> to vector<16x32xf32>
    %176 = arith.mulf %171, %175 : vector<16x32xf32>
    %177 = vector.broadcast %157 : vector<1x32xf32> to vector<16x32xf32>
    %178 = arith.mulf %176, %177 : vector<16x32xf32>
    %179 = vector.broadcast %158 : vector<1x32xf32> to vector<16x32xf32>
    %180 = arith.addf %178, %179 : vector<16x32xf32>
    %181 = vector.shape_cast %180 : vector<16x32xf32> to vector<2x8x32xf32>
    %c0_76 = arith.constant 0 : index
    %c0_77 = arith.constant 0 : index
    %c0_78 = arith.constant 0 : index
    %182 = vector.load %arg15[%c0_76, %c0_77, %c0_78] : memref<2x8x32xf32, #tpu.memory_space<vmem>>, vector<2x8x32xf32>
    tpu.vector_store %arg15[%c0_76, %c0_77, %c0_78], %181 {strides = array<i32>} : memref<2x8x32xf32, #tpu.memory_space<vmem>>, vector<2x8x32xf32>,
    return
  }
  func.func @transform_0(%arg0: i32) -> (i32, i32, i32) {
    %c0_i32 = arith.constant 0 : i32
    %c0_i32_0 = arith.constant 0 : i32
    %c0_i32_1 = arith.constant 0 : i32
    return %arg0, %c0_i32, %c0_i32_0 : i32, i32, i32
  }
  func.func @transform_1(%arg0: i32) -> (i32, i32, i32) {
    %c0_i32 = arith.constant 0 : i32
    %c0_i32_0 = arith.constant 0 : i32
    %c0_i32_1 = arith.constant 0 : i32
    return %arg0, %c0_i32, %c0_i32_0 : i32, i32, i32
  }
  func.func @transform_2(%arg0: i32) -> (i32, i32) {
    %c0_i32 = arith.constant 0 : i32
    %c0_i32_0 = arith.constant 0 : i32
    %c0_i32_1 = arith.constant 0 : i32
    return %c0_i32, %c0_i32_0 : i32, i32
  }
  func.func @transform_3(%arg0: i32) -> (i32, i32) {
    %c0_i32 = arith.constant 0 : i32
    %c0_i32_0 = arith.constant 0 : i32
    %c0_i32_1 = arith.constant 0 : i32
    return %c0_i32, %c0_i32_0 : i32, i32
  }
  func.func @transform_4(%arg0: i32) -> (i32, i32) {
    %c0_i32 = arith.constant 0 : i32
    %c0_i32_0 = arith.constant 0 : i32
    %c0_i32_1 = arith.constant 0 : i32
    return %c0_i32, %c0_i32_0 : i32, i32
  }
  func.func @transform_5(%arg0: i32) -> (i32, i32) {
    %c0_i32 = arith.constant 0 : i32
    %c0_i32_0 = arith.constant 0 : i32
    %c0_i32_1 = arith.constant 0 : i32
    return %c0_i32, %c0_i32_0 : i32, i32
  }
  func.func @transform_6(%arg0: i32) -> (i32, i32) {
    %c0_i32 = arith.constant 0 : i32
    %c0_i32_0 = arith.constant 0 : i32
    %c0_i32_1 = arith.constant 0 : i32
    return %c0_i32, %c0_i32_0 : i32, i32
  }
  func.func @transform_7(%arg0: i32) -> (i32, i32) {
    %c0_i32 = arith.constant 0 : i32
    %c0_i32_0 = arith.constant 0 : i32
    %c0_i32_1 = arith.constant 0 : i32
    return %c0_i32, %c0_i32_0 : i32, i32
  }
  func.func @transform_8(%arg0: i32) -> (i32, i32) {
    %c0_i32 = arith.constant 0 : i32
    %c0_i32_0 = arith.constant 0 : i32
    %c0_i32_1 = arith.constant 0 : i32
    return %c0_i32, %c0_i32_0 : i32, i32
  }
  func.func @transform_9(%arg0: i32) -> (i32, i32) {
    %c0_i32 = arith.constant 0 : i32
    %c0_i32_0 = arith.constant 0 : i32
    %c0_i32_1 = arith.constant 0 : i32
    return %c0_i32, %c0_i32_0 : i32, i32
  }
  func.func @transform_10(%arg0: i32) -> (i32, i32) {
    %c0_i32 = arith.constant 0 : i32
    %c0_i32_0 = arith.constant 0 : i32
    %c0_i32_1 = arith.constant 0 : i32
    return %c0_i32, %c0_i32_0 : i32, i32
  }
  func.func @transform_11(%arg0: i32) -> (i32, i32) {
    %c0_i32 = arith.constant 0 : i32
    %c0_i32_0 = arith.constant 0 : i32
    %c0_i32_1 = arith.constant 0 : i32
    return %c0_i32, %c0_i32_0 : i32, i32
  }
  func.func @transform_12(%arg0: i32) -> (i32, i32) {
    %c0_i32 = arith.constant 0 : i32
    %c0_i32_0 = arith.constant 0 : i32
    %c0_i32_1 = arith.constant 0 : i32
    return %c0_i32, %c0_i32_0 : i32, i32
  }
  func.func @transform_13(%arg0: i32) -> (i32, i32) {
    %c0_i32 = arith.constant 0 : i32
    %c0_i32_0 = arith.constant 0 : i32
    %c0_i32_1 = arith.constant 0 : i32
    return %c0_i32, %c0_i32_0 : i32, i32
  }
  func.func @transform_14(%arg0: i32) -> (i32, i32, i32) {
    %c0_i32 = arith.constant 0 : i32
    %c0_i32_0 = arith.constant 0 : i32
    %c0_i32_1 = arith.constant 0 : i32
    return %arg0, %c0_i32, %c0_i32_0 : i32, i32, i32
  }
}

module attributes {stable_mosaic.version = 11 : i64} {
  func.func @encoder_layer_kernel(%arg0: i32, %arg1: memref<2x8x32xf32, #tpu.memory_space<vmem>>, %arg2: memref<2x1x8xf32, #tpu.memory_space<vmem>>, %arg3: memref<32x96xbf16, #tpu.memory_space<vmem>>, %arg4: memref<1x96xf32, #tpu.memory_space<vmem>>, %arg5: memref<32x32xbf16, #tpu.memory_space<vmem>>, %arg6: memref<1x32xf32, #tpu.memory_space<vmem>>, %arg7: memref<1x32xf32, #tpu.memory_space<vmem>>, %arg8: memref<1x32xf32, #tpu.memory_space<vmem>>, %arg9: memref<32x64xbf16, #tpu.memory_space<vmem>>, %arg10: memref<1x64xf32, #tpu.memory_space<vmem>>, %arg11: memref<64x32xbf16, #tpu.memory_space<vmem>>, %arg12: memref<1x32xf32, #tpu.memory_space<vmem>>, %arg13: memref<1x32xf32, #tpu.memory_space<vmem>>, %arg14: memref<1x32xf32, #tpu.memory_space<vmem>>, %arg15: memref<2x8x32xf32, #tpu.memory_space<vmem>>, %arg16: memref<2x8x32xbf16, #tpu.memory_space<vmem>>) attributes {dimension_semantics = [#tpu.dimension_semantics<parallel>], iteration_bounds = array<i64: 1>, scalar_prefetch = 0 : i64, scratch_operands = 1 : i64, tpu.core_type = #tpu.core_type<tc>, window_params = [{transform_indices = @transform_0, window_bounds = array<i64: 2, 8, 32>}, {transform_indices = @transform_1, window_bounds = array<i64: 2, 1, 8>}, {pipeline_mode = #tpu.pipeline_mode<synchronous>, transform_indices = @transform_2, window_bounds = array<i64: 32, 96>}, {pipeline_mode = #tpu.pipeline_mode<synchronous>, transform_indices = @transform_3, window_bounds = array<i64: 1, 96>}, {pipeline_mode = #tpu.pipeline_mode<synchronous>, transform_indices = @transform_4, window_bounds = array<i64: 32, 32>}, {pipeline_mode = #tpu.pipeline_mode<synchronous>, transform_indices = @transform_5, window_bounds = array<i64: 1, 32>}, {pipeline_mode = #tpu.pipeline_mode<synchronous>, transform_indices = @transform_6, window_bounds = array<i64: 1, 32>}, {pipeline_mode = #tpu.pipeline_mode<synchronous>, transform_indices = @transform_7, window_bounds = array<i64: 1, 32>}, {pipeline_mode = #tpu.pipeline_mode<synchronous>, transform_indices = @transform_8, window_bounds = array<i64: 32, 64>}, {pipeline_mode = #tpu.pipeline_mode<synchronous>, transform_indices = @transform_9, window_bounds = array<i64: 1, 64>}, {pipeline_mode = #tpu.pipeline_mode<synchronous>, transform_indices = @transform_10, window_bounds = array<i64: 64, 32>}, {pipeline_mode = #tpu.pipeline_mode<synchronous>, transform_indices = @transform_11, window_bounds = array<i64: 1, 32>}, {pipeline_mode = #tpu.pipeline_mode<synchronous>, transform_indices = @transform_12, window_bounds = array<i64: 1, 32>}, {pipeline_mode = #tpu.pipeline_mode<synchronous>, transform_indices = @transform_13, window_bounds = array<i64: 1, 32>}, {transform_indices = @transform_14, window_bounds = array<i64: 2, 8, 32>}]} {
    %c0 = arith.constant 0 : index
    %c0_0 = arith.constant 0 : index
    %c0_1 = arith.constant 0 : index
    %0 = vector.load %arg1[%c0, %c0_0, %c0_1] : memref<2x8x32xf32, #tpu.memory_space<vmem>>, vector<2x8x32xf32>
    %1 = vector.shape_cast %0 : vector<2x8x32xf32> to vector<16x32xf32>
    %2 = arith.truncf %1 : vector<16x32xf32> to vector<16x32xbf16>
    %c0_2 = arith.constant 0 : index
    %c0_3 = arith.constant 0 : index
    %3 = vector.load %arg3[%c0_2, %c0_3] : memref<32x96xbf16, #tpu.memory_space<vmem>>, vector<32x96xbf16>
    %cst = arith.constant dense<0.000000e+00> : vector<16x96xf32>
    %4 = tpu.matmul %2, %3, %cst {dimension_numbers = #tpu.dot_dimension_numbers<[1], [0], [0], [1], [0, 0, 1, 1], [], []>} : vector<16x32xbf16>, vector<32x96xbf16>, vector<16x96xf32> -> vector<16x96xf32>
    %5 = vector.extract_strided_slice %4 {offsets = [0, 0], sizes = [16, 32], strides = [1, 1]} : vector<16x96xf32> to vector<16x32xf32>
    %c0_4 = arith.constant 0 : index
    %c0_5 = arith.constant 0 : index
    %6 = vector.load %arg4[%c0_4, %c0_5] : memref<1x96xf32, #tpu.memory_space<vmem>>, vector<1x32xf32>
    %7 = vector.broadcast %6 : vector<1x32xf32> to vector<16x32xf32>
    %8 = arith.addf %5, %7 : vector<16x32xf32>
    %cst_6 = arith.constant 0.353553385 : f32
    %9 = vector.broadcast %cst_6 : f32 to vector<16x32xf32>
    %10 = arith.mulf %8, %9 : vector<16x32xf32>
    %11 = arith.truncf %10 : vector<16x32xf32> to vector<16x32xbf16>
    %12 = vector.shape_cast %11 : vector<16x32xbf16> to vector<2x8x32xbf16>
    %13 = vector.extract_strided_slice %4 {offsets = [0, 32], sizes = [16, 32], strides = [1, 1]} : vector<16x96xf32> to vector<16x32xf32>
    %c0_7 = arith.constant 0 : index
    %c32 = arith.constant 32 : index
    %14 = vector.load %arg4[%c0_7, %c32] : memref<1x96xf32, #tpu.memory_space<vmem>>, vector<1x32xf32>
    %15 = vector.broadcast %14 : vector<1x32xf32> to vector<16x32xf32>
    %16 = arith.addf %13, %15 : vector<16x32xf32>
    %17 = arith.truncf %16 : vector<16x32xf32> to vector<16x32xbf16>
    %18 = vector.shape_cast %17 : vector<16x32xbf16> to vector<2x8x32xbf16>
    %19 = vector.extract_strided_slice %4 {offsets = [0, 64], sizes = [16, 32], strides = [1, 1]} : vector<16x96xf32> to vector<16x32xf32>
    %c0_8 = arith.constant 0 : index
    %c64 = arith.constant 64 : index
    %20 = vector.load %arg4[%c0_8, %c64] : memref<1x96xf32, #tpu.memory_space<vmem>>, vector<1x32xf32>
    %21 = vector.broadcast %20 : vector<1x32xf32> to vector<16x32xf32>
    %22 = arith.addf %19, %21 : vector<16x32xf32>
    %23 = arith.truncf %22 : vector<16x32xf32> to vector<16x32xbf16>
    %24 = vector.shape_cast %23 : vector<16x32xbf16> to vector<2x8x32xbf16>
    %c0_9 = arith.constant 0 : index
    %c0_10 = arith.constant 0 : index
    %c0_11 = arith.constant 0 : index
    %25 = vector.load %arg2[%c0_9, %c0_10, %c0_11] : memref<2x1x8xf32, #tpu.memory_space<vmem>>, vector<2x1x8xf32>
    %cst_12 = arith.constant -1.000000e+09 : f32
    %26 = vector.broadcast %cst_12 : f32 to vector<2x1x8xf32>
    %27 = arith.mulf %25, %26 : vector<2x1x8xf32>
    %28 = vector.extract_strided_slice %12 {offsets = [0, 0, 0], sizes = [2, 8, 8], strides = [1, 1, 1]} : vector<2x8x32xbf16> to vector<2x8x8xbf16>
    %29 = vector.extract_strided_slice %18 {offsets = [0, 0, 0], sizes = [2, 8, 8], strides = [1, 1, 1]} : vector<2x8x32xbf16> to vector<2x8x8xbf16>
    "tpu.trace_start"() <{level = 10 : i32, message = "bqd,bkd->bqk"}> : () -> ()
    %cst_13 = arith.constant dense<0.000000e+00> : vector<2x8x8xf32>
    %30 = tpu.matmul %28, %29, %cst_13 {dimension_numbers = #tpu.dot_dimension_numbers<[2], [2], [1], [1], [0, 0, 0, 1, 1, 1], [0], [0]>} : vector<2x8x8xbf16>, vector<2x8x8xbf16>, vector<2x8x8xf32> -> vector<2x8x8xf32>
    "tpu.trace_stop"() : () -> ()
    %31 = vector.broadcast %27 : vector<2x1x8xf32> to vector<2x8x8xf32>
    %32 = arith.addf %30, %31 : vector<2x8x8xf32>
    %cst_14 = arith.constant dense<0xFF800000> : vector<2x8xf32>
    %33 = vector.multi_reduction <maximumf>, %32, %cst_14 [2] : vector<2x8x8xf32> to vector<2x8xf32>
    %34 = vector.shape_cast %33 : vector<2x8xf32> to vector<2x8x1xf32>
    %35 = vector.broadcast %34 : vector<2x8x1xf32> to vector<2x8x8xf32>
    %36 = arith.subf %32, %35 : vector<2x8x8xf32>
    %37 = math.exp %36 : vector<2x8x8xf32>
    %cst_15 = arith.constant dense<0.000000e+00> : vector<2x8xf32>
    %38 = vector.multi_reduction <add>, %37, %cst_15 [2] : vector<2x8x8xf32> to vector<2x8xf32>
    %39 = vector.shape_cast %38 : vector<2x8xf32> to vector<2x8x1xf32>
    %40 = tpu.reciprocal %39 {approx = true} : vector<2x8x1xf32> -> vector<2x8x1xf32>
    %41 = vector.broadcast %40 : vector<2x8x1xf32> to vector<2x8x8xf32>
    %42 = arith.mulf %37, %41 : vector<2x8x8xf32>
    %43 = arith.truncf %42 : vector<2x8x8xf32> to vector<2x8x8xbf16>
    %44 = vector.extract_strided_slice %24 {offsets = [0, 0, 0], sizes = [2, 8, 8], strides = [1, 1, 1]} : vector<2x8x32xbf16> to vector<2x8x8xbf16>
    "tpu.trace_start"() <{level = 10 : i32, message = "bqk,bkd->bqd"}> : () -> ()
    %cst_16 = arith.constant dense<0.000000e+00> : vector<2x8x8xf32>
    %45 = tpu.matmul %43, %44, %cst_16 {dimension_numbers = #tpu.dot_dimension_numbers<[2], [1], [1], [2], [0, 0, 0, 1, 1, 2], [0], [0]>} : vector<2x8x8xbf16>, vector<2x8x8xbf16>, vector<2x8x8xf32> -> vector<2x8x8xf32>
    "tpu.trace_stop"() : () -> ()
    %46 = arith.truncf %45 : vector<2x8x8xf32> to vector<2x8x8xbf16>
    %c0_17 = arith.constant 0 : index
    %c0_18 = arith.constant 0 : index
    %c0_19 = arith.constant 0 : index
    %47 = vector.load %arg16[%c0_17, %c0_18, %c0_19] : memref<2x8x32xbf16, #tpu.memory_space<vmem>>, vector<2x8x8xbf16>
    tpu.vector_store %arg16[%c0_17, %c0_18, %c0_19], %46 {strides = array<i32>} : memref<2x8x32xbf16, #tpu.memory_space<vmem>>, vector<2x8x8xbf16>,
    %48 = vector.extract_strided_slice %12 {offsets = [0, 0, 8], sizes = [2, 8, 8], strides = [1, 1, 1]} : vector<2x8x32xbf16> to vector<2x8x8xbf16>
    %49 = vector.extract_strided_slice %18 {offsets = [0, 0, 8], sizes = [2, 8, 8], strides = [1, 1, 1]} : vector<2x8x32xbf16> to vector<2x8x8xbf16>
    "tpu.trace_start"() <{level = 10 : i32, message = "bqd,bkd->bqk"}> : () -> ()
    %cst_20 = arith.constant dense<0.000000e+00> : vector<2x8x8xf32>
    %50 = tpu.matmul %48, %49, %cst_20 {dimension_numbers = #tpu.dot_dimension_numbers<[2], [2], [1], [1], [0, 0, 0, 1, 1, 1], [0], [0]>} : vector<2x8x8xbf16>, vector<2x8x8xbf16>, vector<2x8x8xf32> -> vector<2x8x8xf32>
    "tpu.trace_stop"() : () -> ()
    %51 = vector.broadcast %27 : vector<2x1x8xf32> to vector<2x8x8xf32>
    %52 = arith.addf %50, %51 : vector<2x8x8xf32>
    %cst_21 = arith.constant dense<0xFF800000> : vector<2x8xf32>
    %53 = vector.multi_reduction <maximumf>, %52, %cst_21 [2] : vector<2x8x8xf32> to vector<2x8xf32>
    %54 = vector.shape_cast %53 : vector<2x8xf32> to vector<2x8x1xf32>
    %55 = vector.broadcast %54 : vector<2x8x1xf32> to vector<2x8x8xf32>
    %56 = arith.subf %52, %55 : vector<2x8x8xf32>
    %57 = math.exp %56 : vector<2x8x8xf32>
    %cst_22 = arith.constant dense<0.000000e+00> : vector<2x8xf32>
    %58 = vector.multi_reduction <add>, %57, %cst_22 [2] : vector<2x8x8xf32> to vector<2x8xf32>
    %59 = vector.shape_cast %58 : vector<2x8xf32> to vector<2x8x1xf32>
    %60 = tpu.reciprocal %59 {approx = true} : vector<2x8x1xf32> -> vector<2x8x1xf32>
    %61 = vector.broadcast %60 : vector<2x8x1xf32> to vector<2x8x8xf32>
    %62 = arith.mulf %57, %61 : vector<2x8x8xf32>
    %63 = arith.truncf %62 : vector<2x8x8xf32> to vector<2x8x8xbf16>
    %64 = vector.extract_strided_slice %24 {offsets = [0, 0, 8], sizes = [2, 8, 8], strides = [1, 1, 1]} : vector<2x8x32xbf16> to vector<2x8x8xbf16>
    "tpu.trace_start"() <{level = 10 : i32, message = "bqk,bkd->bqd"}> : () -> ()
    %cst_23 = arith.constant dense<0.000000e+00> : vector<2x8x8xf32>
    %65 = tpu.matmul %63, %64, %cst_23 {dimension_numbers = #tpu.dot_dimension_numbers<[2], [1], [1], [2], [0, 0, 0, 1, 1, 2], [0], [0]>} : vector<2x8x8xbf16>, vector<2x8x8xbf16>, vector<2x8x8xf32> -> vector<2x8x8xf32>
    "tpu.trace_stop"() : () -> ()
    %66 = arith.truncf %65 : vector<2x8x8xf32> to vector<2x8x8xbf16>
    %c0_24 = arith.constant 0 : index
    %c0_25 = arith.constant 0 : index
    %c8 = arith.constant 8 : index
    %67 = vector.load %arg16[%c0_24, %c0_25, %c8] : memref<2x8x32xbf16, #tpu.memory_space<vmem>>, vector<2x8x8xbf16>
    tpu.vector_store %arg16[%c0_24, %c0_25, %c8], %66 {strides = array<i32>} : memref<2x8x32xbf16, #tpu.memory_space<vmem>>, vector<2x8x8xbf16>,
    %68 = vector.extract_strided_slice %12 {offsets = [0, 0, 16], sizes = [2, 8, 8], strides = [1, 1, 1]} : vector<2x8x32xbf16> to vector<2x8x8xbf16>
    %69 = vector.extract_strided_slice %18 {offsets = [0, 0, 16], sizes = [2, 8, 8], strides = [1, 1, 1]} : vector<2x8x32xbf16> to vector<2x8x8xbf16>
    "tpu.trace_start"() <{level = 10 : i32, message = "bqd,bkd->bqk"}> : () -> ()
    %cst_26 = arith.constant dense<0.000000e+00> : vector<2x8x8xf32>
    %70 = tpu.matmul %68, %69, %cst_26 {dimension_numbers = #tpu.dot_dimension_numbers<[2], [2], [1], [1], [0, 0, 0, 1, 1, 1], [0], [0]>} : vector<2x8x8xbf16>, vector<2x8x8xbf16>, vector<2x8x8xf32> -> vector<2x8x8xf32>
    "tpu.trace_stop"() : () -> ()
    %71 = vector.broadcast %27 : vector<2x1x8xf32> to vector<2x8x8xf32>
    %72 = arith.addf %70, %71 : vector<2x8x8xf32>
    %cst_27 = arith.constant dense<0xFF800000> : vector<2x8xf32>
    %73 = vector.multi_reduction <maximumf>, %72, %cst_27 [2] : vector<2x8x8xf32> to vector<2x8xf32>
    %74 = vector.shape_cast %73 : vector<2x8xf32> to vector<2x8x1xf32>
    %75 = vector.broadcast %74 : vector<2x8x1xf32> to vector<2x8x8xf32>
    %76 = arith.subf %72, %75 : vector<2x8x8xf32>
    %77 = math.exp %76 : vector<2x8x8xf32>
    %cst_28 = arith.constant dense<0.000000e+00> : vector<2x8xf32>
    %78 = vector.multi_reduction <add>, %77, %cst_28 [2] : vector<2x8x8xf32> to vector<2x8xf32>
    %79 = vector.shape_cast %78 : vector<2x8xf32> to vector<2x8x1xf32>
    %80 = tpu.reciprocal %79 {approx = true} : vector<2x8x1xf32> -> vector<2x8x1xf32>
    %81 = vector.broadcast %80 : vector<2x8x1xf32> to vector<2x8x8xf32>
    %82 = arith.mulf %77, %81 : vector<2x8x8xf32>
    %83 = arith.truncf %82 : vector<2x8x8xf32> to vector<2x8x8xbf16>
    %84 = vector.extract_strided_slice %24 {offsets = [0, 0, 16], sizes = [2, 8, 8], strides = [1, 1, 1]} : vector<2x8x32xbf16> to vector<2x8x8xbf16>
    "tpu.trace_start"() <{level = 10 : i32, message = "bqk,bkd->bqd"}> : () -> ()
    %cst_29 = arith.constant dense<0.000000e+00> : vector<2x8x8xf32>
    %85 = tpu.matmul %83, %84, %cst_29 {dimension_numbers = #tpu.dot_dimension_numbers<[2], [1], [1], [2], [0, 0, 0, 1, 1, 2], [0], [0]>} : vector<2x8x8xbf16>, vector<2x8x8xbf16>, vector<2x8x8xf32> -> vector<2x8x8xf32>
    "tpu.trace_stop"() : () -> ()
    %86 = arith.truncf %85 : vector<2x8x8xf32> to vector<2x8x8xbf16>
    %c0_30 = arith.constant 0 : index
    %c0_31 = arith.constant 0 : index
    %c16 = arith.constant 16 : index
    %87 = vector.load %arg16[%c0_30, %c0_31, %c16] : memref<2x8x32xbf16, #tpu.memory_space<vmem>>, vector<2x8x8xbf16>
    tpu.vector_store %arg16[%c0_30, %c0_31, %c16], %86 {strides = array<i32>} : memref<2x8x32xbf16, #tpu.memory_space<vmem>>, vector<2x8x8xbf16>,
    %88 = vector.extract_strided_slice %12 {offsets = [0, 0, 24], sizes = [2, 8, 8], strides = [1, 1, 1]} : vector<2x8x32xbf16> to vector<2x8x8xbf16>
    %89 = vector.extract_strided_slice %18 {offsets = [0, 0, 24], sizes = [2, 8, 8], strides = [1, 1, 1]} : vector<2x8x32xbf16> to vector<2x8x8xbf16>
    "tpu.trace_start"() <{level = 10 : i32, message = "bqd,bkd->bqk"}> : () -> ()
    %cst_32 = arith.constant dense<0.000000e+00> : vector<2x8x8xf32>
    %90 = tpu.matmul %88, %89, %cst_32 {dimension_numbers = #tpu.dot_dimension_numbers<[2], [2], [1], [1], [0, 0, 0, 1, 1, 1], [0], [0]>} : vector<2x8x8xbf16>, vector<2x8x8xbf16>, vector<2x8x8xf32> -> vector<2x8x8xf32>
    "tpu.trace_stop"() : () -> ()
    %91 = vector.broadcast %27 : vector<2x1x8xf32> to vector<2x8x8xf32>
    %92 = arith.addf %90, %91 : vector<2x8x8xf32>
    %cst_33 = arith.constant dense<0xFF800000> : vector<2x8xf32>
    %93 = vector.multi_reduction <maximumf>, %92, %cst_33 [2] : vector<2x8x8xf32> to vector<2x8xf32>
    %94 = vector.shape_cast %93 : vector<2x8xf32> to vector<2x8x1xf32>
    %95 = vector.broadcast %94 : vector<2x8x1xf32> to vector<2x8x8xf32>
    %96 = arith.subf %92, %95 : vector<2x8x8xf32>
    %97 = math.exp %96 : vector<2x8x8xf32>
    %cst_34 = arith.constant dense<0.000000e+00> : vector<2x8xf32>
    %98 = vector.multi_reduction <add>, %97, %cst_34 [2] : vector<2x8x8xf32> to vector<2x8xf32>
    %99 = vector.shape_cast %98 : vector<2x8xf32> to vector<2x8x1xf32>
    %100 = tpu.reciprocal %99 {approx = true} : vector<2x8x1xf32> -> vector<2x8x1xf32>
    %101 = vector.broadcast %100 : vector<2x8x1xf32> to vector<2x8x8xf32>
    %102 = arith.mulf %97, %101 : vector<2x8x8xf32>
    %103 = arith.truncf %102 : vector<2x8x8xf32> to vector<2x8x8xbf16>
    %104 = vector.extract_strided_slice %24 {offsets = [0, 0, 24], sizes = [2, 8, 8], strides = [1, 1, 1]} : vector<2x8x32xbf16> to vector<2x8x8xbf16>
    "tpu.trace_start"() <{level = 10 : i32, message = "bqk,bkd->bqd"}> : () -> ()
    %cst_35 = arith.constant dense<0.000000e+00> : vector<2x8x8xf32>
    %105 = tpu.matmul %103, %104, %cst_35 {dimension_numbers = #tpu.dot_dimension_numbers<[2], [1], [1], [2], [0, 0, 0, 1, 1, 2], [0], [0]>} : vector<2x8x8xbf16>, vector<2x8x8xbf16>, vector<2x8x8xf32> -> vector<2x8x8xf32>
    "tpu.trace_stop"() : () -> ()
    %106 = arith.truncf %105 : vector<2x8x8xf32> to vector<2x8x8xbf16>
    %c0_36 = arith.constant 0 : index
    %c0_37 = arith.constant 0 : index
    %c24 = arith.constant 24 : index
    %107 = vector.load %arg16[%c0_36, %c0_37, %c24] : memref<2x8x32xbf16, #tpu.memory_space<vmem>>, vector<2x8x8xbf16>
    tpu.vector_store %arg16[%c0_36, %c0_37, %c24], %106 {strides = array<i32>} : memref<2x8x32xbf16, #tpu.memory_space<vmem>>, vector<2x8x8xbf16>,
    %c0_38 = arith.constant 0 : index
    %c0_39 = arith.constant 0 : index
    %c0_40 = arith.constant 0 : index
    %108 = vector.load %arg16[%c0_38, %c0_39, %c0_40] : memref<2x8x32xbf16, #tpu.memory_space<vmem>>, vector<2x8x32xbf16>
    %109 = vector.shape_cast %108 : vector<2x8x32xbf16> to vector<16x32xbf16>
    %c0_41 = arith.constant 0 : index
    %c0_42 = arith.constant 0 : index
    %110 = vector.load %arg5[%c0_41, %c0_42] : memref<32x32xbf16, #tpu.memory_space<vmem>>, vector<32x32xbf16>
    %cst_43 = arith.constant dense<0.000000e+00> : vector<16x32xf32>
    %111 = tpu.matmul %109, %110, %cst_43 {dimension_numbers = #tpu.dot_dimension_numbers<[1], [0], [0], [1], [0, 0, 1, 1], [], []>} : vector<16x32xbf16>, vector<32x32xbf16>, vector<16x32xf32> -> vector<16x32xf32>
    %c0_44 = arith.constant 0 : index
    %c0_45 = arith.constant 0 : index
    %112 = vector.load %arg6[%c0_44, %c0_45] : memref<1x32xf32, #tpu.memory_space<vmem>>, vector<1x32xf32>
    %113 = vector.broadcast %112 : vector<1x32xf32> to vector<16x32xf32>
    %114 = arith.addf %111, %113 : vector<16x32xf32>
    %115 = arith.addf %114, %1 : vector<16x32xf32>
    %c0_46 = arith.constant 0 : index
    %c0_47 = arith.constant 0 : index
    %116 = vector.load %arg7[%c0_46, %c0_47] : memref<1x32xf32, #tpu.memory_space<vmem>>, vector<1x32xf32>
    %c0_48 = arith.constant 0 : index
    %c0_49 = arith.constant 0 : index
    %117 = vector.load %arg8[%c0_48, %c0_49] : memref<1x32xf32, #tpu.memory_space<vmem>>, vector<1x32xf32>
    %cst_50 = arith.constant dense<0.000000e+00> : vector<16xf32>
    %118 = vector.multi_reduction <add>, %115, %cst_50 [1] : vector<16x32xf32> to vector<16xf32>
    %119 = vector.shape_cast %118 : vector<16xf32> to vector<16x1xf32>
    %cst_51 = arith.constant 3.200000e+01 : f32
    %120 = vector.broadcast %cst_51 : f32 to vector<16x1xf32>
    %121 = arith.divf %119, %120 : vector<16x1xf32>
    %122 = vector.broadcast %121 : vector<16x1xf32> to vector<16x32xf32>
    %123 = arith.subf %115, %122 : vector<16x32xf32>
    %124 = arith.mulf %123, %123 : vector<16x32xf32>
    %cst_52 = arith.constant dense<0.000000e+00> : vector<16xf32>
    %125 = vector.multi_reduction <add>, %124, %cst_52 [1] : vector<16x32xf32> to vector<16xf32>
    %126 = vector.shape_cast %125 : vector<16xf32> to vector<16x1xf32>
    %cst_53 = arith.constant 3.200000e+01 : f32
    %127 = vector.broadcast %cst_53 : f32 to vector<16x1xf32>
    %128 = arith.divf %126, %127 : vector<16x1xf32>
    %129 = vector.broadcast %121 : vector<16x1xf32> to vector<16x32xf32>
    %130 = arith.subf %115, %129 : vector<16x32xf32>
    %cst_54 = arith.constant 9.99999997E-7 : f32
    %131 = vector.broadcast %cst_54 : f32 to vector<16x1xf32>
    %132 = arith.addf %128, %131 : vector<16x1xf32>
    %133 = math.rsqrt %132 : vector<16x1xf32>
    %134 = vector.broadcast %133 : vector<16x1xf32> to vector<16x32xf32>
    %135 = arith.mulf %130, %134 : vector<16x32xf32>
    %136 = vector.broadcast %116 : vector<1x32xf32> to vector<16x32xf32>
    %137 = arith.mulf %135, %136 : vector<16x32xf32>
    %138 = vector.broadcast %117 : vector<1x32xf32> to vector<16x32xf32>
    %139 = arith.addf %137, %138 : vector<16x32xf32>
    %140 = arith.truncf %139 : vector<16x32xf32> to vector<16x32xbf16>
    %cst_55 = arith.constant 0.000000e+00 : f32
    %141 = vector.broadcast %cst_55 : f32 to vector<16x32xf32>
    %c0_56 = arith.constant 0 : index
    %c0_57 = arith.constant 0 : index
    %142 = vector.load %arg9[%c0_56, %c0_57] : memref<32x64xbf16, #tpu.memory_space<vmem>>, vector<32x64xbf16>
    %cst_58 = arith.constant dense<0.000000e+00> : vector<16x64xf32>
    %143 = tpu.matmul %140, %142, %cst_58 {dimension_numbers = #tpu.dot_dimension_numbers<[1], [0], [0], [1], [0, 0, 1, 1], [], []>} : vector<16x32xbf16>, vector<32x64xbf16>, vector<16x64xf32> -> vector<16x64xf32>
    %c0_59 = arith.constant 0 : index
    %c0_60 = arith.constant 0 : index
    %144 = vector.load %arg10[%c0_59, %c0_60] : memref<1x64xf32, #tpu.memory_space<vmem>>, vector<1x64xf32>
    %145 = vector.broadcast %144 : vector<1x64xf32> to vector<16x64xf32>
    %146 = arith.addf %143, %145 : vector<16x64xf32>
    %cst_61 = arith.constant 0.000000e+00 : f32
    %147 = vector.broadcast %cst_61 : f32 to vector<16x64xf32>
    %148 = arith.maximumf %146, %147 : vector<16x64xf32>
    %149 = arith.truncf %148 : vector<16x64xf32> to vector<16x64xbf16>
    %c0_62 = arith.constant 0 : index
    %c0_63 = arith.constant 0 : index
    %150 = vector.load %arg11[%c0_62, %c0_63] : memref<64x32xbf16, #tpu.memory_space<vmem>>, vector<64x32xbf16>
    %cst_64 = arith.constant dense<0.000000e+00> : vector<16x32xf32>
    %151 = tpu.matmul %149, %150, %cst_64 {dimension_numbers = #tpu.dot_dimension_numbers<[1], [0], [0], [1], [0, 0, 1, 1], [], []>} : vector<16x64xbf16>, vector<64x32xbf16>, vector<16x32xf32> -> vector<16x32xf32>
    %152 = arith.addf %141, %151 : vector<16x32xf32>
    %c0_65 = arith.constant 0 : index
    %c0_66 = arith.constant 0 : index
    %153 = vector.load %arg12[%c0_65, %c0_66] : memref<1x32xf32, #tpu.memory_space<vmem>>, vector<1x32xf32>
    %154 = vector.broadcast %153 : vector<1x32xf32> to vector<16x32xf32>
    %155 = arith.addf %152, %154 : vector<16x32xf32>
    %156 = arith.addf %155, %139 : vector<16x32xf32>
    %c0_67 = arith.constant 0 : index
    %c0_68 = arith.constant 0 : index
    %157 = vector.load %arg13[%c0_67, %c0_68] : memref<1x32xf32, #tpu.memory_space<vmem>>, vector<1x32xf32>
    %c0_69 = arith.constant 0 : index
    %c0_70 = arith.constant 0 : index
    %158 = vector.load %arg14[%c0_69, %c0_70] : memref<1x32xf32, #tpu.memory_space<vmem>>, vector<1x32xf32>
    %cst_71 = arith.constant dense<0.000000e+00> : vector<16xf32>
    %159 = vector.multi_reduction <add>, %156, %cst_71 [1] : vector<16x32xf32> to vector<16xf32>
    %160 = vector.shape_cast %159 : vector<16xf32> to vector<16x1xf32>
    %cst_72 = arith.constant 3.200000e+01 : f32
    %161 = vector.broadcast %cst_72 : f32 to vector<16x1xf32>
    %162 = arith.divf %160, %161 : vector<16x1xf32>
    %163 = vector.broadcast %162 : vector<16x1xf32> to vector<16x32xf32>
    %164 = arith.subf %156, %163 : vector<16x32xf32>
    %165 = arith.mulf %164, %164 : vector<16x32xf32>
    %cst_73 = arith.constant dense<0.000000e+00> : vector<16xf32>
    %166 = vector.multi_reduction <add>, %165, %cst_73 [1] : vector<16x32xf32> to vector<16xf32>
    %167 = vector.shape_cast %166 : vector<16xf32> to vector<16x1xf32>
    %cst_74 = arith.constant 3.200000e+01 : f32
    %168 = vector.broadcast %cst_74 : f32 to vector<16x1xf32>
    %169 = arith.divf %167, %168 : vector<16x1xf32>
    %170 = vector.broadcast %162 : vector<16x1xf32> to vector<16x32xf32>
    %171 = arith.subf %156, %170 : vector<16x32xf32>
    %cst_75 = arith.constant 9.99999997E-7 : f32
    %172 = vector.broadcast %cst_75 : f32 to vector<16x1xf32>
    %173 = arith.addf %169, %172 : vector<16x1xf32>
    %174 = math.rsqrt %173 : vector<16x1xf32>
    %175 = vector.broadcast %174 : vector<16x1xf32> to vector<16x32xf32>
    %176 = arith.mulf %171, %175 : vector<16x32xf32>
    %177 = vector.broadcast %157 : vector<1x32xf32> to vector<16x32xf32>
    %178 = arith.mulf %176, %177 : vector<16x32xf32>
    %179 = vector.broadcast %158 : vector<1x32xf32> to vector<16x32xf32>
    %180 = arith.addf %178, %179 : vector<16x32xf32>
    %181 = vector.shape_cast %180 : vector<16x32xf32> to vector<2x8x32xf32>
    %c0_76 = arith.constant 0 : index
    %c0_77 = arith.constant 0 : index
    %c0_78 = arith.constant 0 : index
    %182 = vector.load %arg15[%c0_76, %c0_77, %c0_78] : memref<2x8x32xf32, #tpu.memory_space<vmem>>, vector<2x8x32xf32>
    tpu.vector_store %arg15[%c0_76, %c0_77, %c0_78], %181 {strides = array<i32>} : memref<2x8x32xf32, #tpu.memory_space<vmem>>, vector<2x8x32xf32>,
    return
  }
  func.func @transform_0(%arg0: i32) -> (i32, i32, i32) {
    %c0_i32 = arith.constant 0 : i32
    %c0_i32_0 = arith.constant 0 : i32
    %c0_i32_1 = arith.constant 0 : i32
    return %arg0, %c0_i32, %c0_i32_0 : i32, i32, i32
  }
  func.func @transform_1(%arg0: i32) -> (i32, i32, i32) {
    %c0_i32 = arith.constant 0 : i32
    %c0_i32_0 = arith.constant 0 : i32
    %c0_i32_1 = arith.constant 0 : i32
    return %arg0, %c0_i32, %c0_i32_0 : i32, i32, i32
  }
  func.func @transform_2(%arg0: i32) -> (i32, i32) {
    %c0_i32 = arith.constant 0 : i32
    %c0_i32_0 = arith.constant 0 : i32
    %c0_i32_1 = arith.constant 0 : i32
    return %c0_i32, %c0_i32_0 : i32, i32
  }
  func.func @transform_3(%arg0: i32) -> (i32, i32) {
    %c0_i32 = arith.constant 0 : i32
    %c0_i32_0 = arith.constant 0 : i32
    %c0_i32_1 = arith.constant 0 : i32
    return %c0_i32, %c0_i32_0 : i32, i32
  }
  func.func @transform_4(%arg0: i32) -> (i32, i32) {
    %c0_i32 = arith.constant 0 : i32
    %c0_i32_0 = arith.constant 0 : i32
    %c0_i32_1 = arith.constant 0 : i32
    return %c0_i32, %c0_i32_0 : i32, i32
  }
  func.func @transform_5(%arg0: i32) -> (i32, i32) {
    %c0_i32 = arith.constant 0 : i32
    %c0_i32_0 = arith.constant 0 : i32
    %c0_i32_1 = arith.constant 0 : i32
    return %c0_i32, %c0_i32_0 : i32, i32
  }
  func.func @transform_6(%arg0: i32) -> (i32, i32) {
    %c0_i32 = arith.constant 0 : i32
    %c0_i32_0 = arith.constant 0 : i32
    %c0_i32_1 = arith.constant 0 : i32
    return %c0_i32, %c0_i32_0 : i32, i32
  }
  func.func @transform_7(%arg0: i32) -> (i32, i32) {
    %c0_i32 = arith.constant 0 : i32
    %c0_i32_0 = arith.constant 0 : i32
    %c0_i32_1 = arith.constant 0 : i32
    return %c0_i32, %c0_i32_0 : i32, i32
  }
  func.func @transform_8(%arg0: i32) -> (i32, i32) {
    %c0_i32 = arith.constant 0 : i32
    %c0_i32_0 = arith.constant 0 : i32
    %c0_i32_1 = arith.constant 0 : i32
    return %c0_i32, %c0_i32_0 : i32, i32
  }
  func.func @transform_9(%arg0: i32) -> (i32, i32) {
    %c0_i32 = arith.constant 0 : i32
    %c0_i32_0 = arith.constant 0 : i32
    %c0_i32_1 = arith.constant 0 : i32
    return %c0_i32, %c0_i32_0 : i32, i32
  }
  func.func @transform_10(%arg0: i32) -> (i32, i32) {
    %c0_i32 = arith.constant 0 : i32
    %c0_i32_0 = arith.constant 0 : i32
    %c0_i32_1 = arith.constant 0 : i32
    return %c0_i32, %c0_i32_0 : i32, i32
  }
  func.func @transform_11(%arg0: i32) -> (i32, i32) {
    %c0_i32 = arith.constant 0 : i32
    %c0_i32_0 = arith.constant 0 : i32
    %c0_i32_1 = arith.constant 0 : i32
    return %c0_i32, %c0_i32_0 : i32, i32
  }
  func.func @transform_12(%arg0: i32) -> (i32, i32) {
    %c0_i32 = arith.constant 0 : i32
    %c0_i32_0 = arith.constant 0 : i32
    %c0_i32_1 = arith.constant 0 : i32
    return %c0_i32, %c0_i32_0 : i32, i32
  }
  func.func @transform_13(%arg0: i32) -> (i32, i32) {
    %c0_i32 = arith.constant 0 : i32
    %c0_i32_0 = arith.constant 0 : i32
    %c0_i32_1 = arith.constant 0 : i32
    return %c0_i32, %c0_i32_0 : i32, i32
  }
  func.func @transform_14(%arg0: i32) -> (i32, i32, i32) {
    %c0_i32 = arith.constant 0 : i32
    %c0_i32_0 = arith.constant 0 : i32
    %c0_i32_1 = arith.constant 0 : i32
    return %arg0, %c0_i32, %c0_i32_0 : i32, i32, i32
  }
}

</mosaic_0001>

<bundles_post_ra>
// kernel: tpu_custom_call.1
= control target key start
LH: loop header
LB: loop body
LE: loop exit
PB: predicated region body
PF: predicated region fallthrough
CT: control target
= control target key end

     0   :  { %19 = vsyncpa [#allocation4], 0  ;;  %s2174_s0 = inlined_call_operand.vmem [shape: f32[2,8,32], index: 0, kind: input, shape index: {}]   ;;  %s2175_s1 = inlined_call_operand.vmem [shape: f32[2,1,8], index: 1, kind: input, shape index: {}]   ;;  %s2176_s2 = inlined_call_operand.vmem [shape: bf16[32,96], index: 2, kind: input, shape index: {}]   ;;  %s2177_s3 = inlined_call_operand.vmem [shape: f32[1,96], index: 3, kind: input, shape index: {}]   ;;  %s2178_s4 = inlined_call_operand.vmem [shape: bf16[32,32], index: 4, kind: input, shape index: {}]   ;;  %s2179_s5 = inlined_call_operand.vmem [shape: f32[1,32], index: 5, kind: input, shape index: {}]   ;;  %s2180_s6 = inlined_call_operand.vmem [shape: f32[1,32], index: 6, kind: input, shape index: {}]   ;;  %s2181_s7 = inlined_call_operand.vmem [shape: f32[1,32], index: 7, kind: input, shape index: {}]   ;;  %s2182_s8 = inlined_call_operand.hbm [shape: bf16[32,64], index: 8, kind: input, shape index: {}]   ;;  %s2183_s9 = inlined_call_operand.vmem [shape: f32[1,64], index: 9, kind: input, shape index: {}]   ;;  %s2184_s10 = inlined_call_operand.vmem [shape: bf16[64,32], index: 10, kind: input, shape index: {}]   ;;  %s2185_s11 = inlined_call_operand.vmem [shape: f32[1,32], index: 11, kind: input, shape index: {}]   ;;  %s2186_s12 = inlined_call_operand.vmem [shape: f32[1,32], index: 12, kind: input, shape index: {}]   ;;  %s2187_s13 = inlined_call_operand.vmem [shape: f32[1,32], index: 13, kind: input, shape index: {}]   ;;  %s2188_s14 = inlined_call_operand.hbm [shape: f32[2,8,32], index: 14, kind: output, shape index: {}]  }
   0x1   :  { %20 = vsyncpa [#allocation5], 0  ;;  %s1797_s29 = smov [#allocation3]   ;;  %s1749_s17 = scalar_lea.hbm %s2182_s8, 256 }
   0x2   :  { %s42_s30 = sshll.u32 %s1797_s29, 4  ;;  %p1750_p0 = scmp.ne.s32.totalorder %s2182_s8, %s1749_s17  ;;  %s43_s30 = int_to_ptr.vmem [resolvable:$true] %s42_s30 }
   0x3   :  { %p1753_p1 = scmp.lt.u32.totalorder %s1749_s17, %s2182_s8 }
   0x5   :  { %p1755_p2 = pnand %p1753_p1, %p1750_p0 }
   0x7   :  { %1758 = shalt.err (!%p1755_p2)
}
   0x8   :  { %s1759_s22 = scalar_lea.vmem %s43_s30, 256  ;;  %p1764_p4 = scmp.lt.s32.totalorder %s43_s30, %s43_s30 }
   0x9   :  { %p1760_p3 = scmp.ne.s32.totalorder %s43_s30, %s1759_s22  ;;  %p1765_p5 = scmp.lt.s32.totalorder %s1759_s22, %s1759_s22 }
   0xb   :  { %p1766_p6 = por %p1765_p5, %p1764_p4 }
   0xd   :  { %p1767_p7 = pnand %p1766_p6, %p1760_p3 }
   0xf   :  { %1770 = shalt.err (!%p1767_p7)
}
  0x10   :  { %s1798_s23 = smov 64   ;;  %s1799_s24 = smov 4  }
  0x11   :  { %48 = dma.hbm_to_vmem [thread:$0]  %s2182_s8, 256, %s43_s30, [#allocation4], %s1798_s23, %s1798_s23, %s1799_s24  }
  0x12   :  { %1793 = dma.done.wait [#allocation4], 256  }
  0x13   :  { %1794 = vsyncadd [#allocation4], 4294967040  ;;  %v1800_v0 = vmov 0.0   ;;  %vm1801_vm0 = vmmov 0   ;;  %v1698_v1 = vld [vmem:[%s2176_s2] sm:$0xff]   ;;  %v1699_v2 = vld [vmem:[%s2176_s2 + $0x8] sm:$0xff]   ;;  %v154_v23 = vlaneseq }
  0x14   :  { %1546 = vmatprep.subr.bf16.mxu0 %v1800_v0  ;;  %1550 = vmatprep.mubr.msk.bf16.mxu0 %vm1801_vm0, %v1800_v0  ;;  %v1921_v3 = vld [vmem:[%s2174_s0] sm:$0xff]  ;;  %v1926_v4 = vld [vmem:[%s2174_s0 + $0x8] sm:$0xff]  ;;  %vm82_vm1 = vcmask 261120   ;;  %s1802_s0 = smov 96   ;;  %vm167_vm2 = vcmask 64512   ;;  %vm292_vm3 = vcmask 1043456  }
  0x15   :  { %1554 = vmatprep.subr.bf16.mxu1 %v1800_v0  ;;  %1556 = vmatprep.mubr.msk.bf16.mxu1 %vm1801_vm0, %v1800_v0  ;;  %v65_v5 = vpack.c.bf16 %v1926_v4, %v1921_v3  ;;  %v1444_v6 = vld [vmem:[%s2177_s3] ss:$0 sm:$0xff]  ;;  %v155_v24 = vshrl.u32 %v154_v23, 7  ;;  %v149_v28 = vld [vmem:[%s2175_s1 + $0x1] sm:$0x1]  ;;  %s1804_s22 = smov 120  }
  0x16   :  { %1547 = vmatpush3.bf16.msra.mxu0 %v1698_v1  ;;  %v148_v25 = vld [vmem:[%s2175_s1] sm:$0x1]  ;;  %v151_v30 = vmul.f32 -1e+09, %v149_v28  ;;  %s1803_s1 = smov 88   ;;  %vm386_vm4 = vcmask 60416  }
  0x17   :  { %1548 = vmatprep.subr.bf16.mxu0 %v1800_v0  ;;  %v150_v26 = vmul.f32 -1e+09, %v148_v25  ;;  %v156_v27 = vsub.s32 0, %v155_v24  ;;  %s1806_s24 = smov 80   ;;  %s1807_s25 = smov 112   ;;  %vm623_vm5 = vcmask 126016  }
  0x18   :  { %s1808_s26 = smov 48   ;;  %s1809_s27 = smov 72   ;;  %vm860_vm6 = vcmask 191616   ;;  %vm1097_vm7 = vcmask 257216   ;;  %vm1331_vm8 = vcmask 523264  }
  0x19   :  { %v1966_v29 = vrot.slane %v150_v26, %v156_v27  ;;  %v1969_v34 = vrot.slane %v151_v30, %v156_v27  ;;  %s1810_s28 = smov 104   ;;  %s1811_s29 = smov 40  }
  0x1a   :  { %1549 = vmatpush3.bf16.msra.mxu0 %v1699_v2  ;;  %s1812_s8 = smov 8   ;;  %s1813_s30 = smov 16  }
  0x1b   :  { %1560 = vmatprep.subr.bf16.mxu0 %v1800_v0  ;;  %s1814_s18 = smov 24   ;;  %s1815_s15 = smov [#allocation6]  }
  0x1c   :  { %s1429_s16 = sshll.u32 %s1815_s15, 4  ;;  %s1430_s16 = int_to_ptr.vmem [resolvable:$true] %s1429_s16 }
  0x1d   :  { %1551 = vmatmul.mubr.msk.bf16.vlgmr.msra.gmra.mrb[0].mxu0 %vm82_vm1, %v65_v5  ;;  %s1771_s17 = scalar_lea.vmem %s1430_s16, 256  ;;  %p1776_p9 = scmp.lt.s32.totalorder %s1430_s16, %s1430_s16 }
  0x1e   :  { %1562 = vmatprep.mubr.msk.bf16.mxu0 %vm1801_vm0, %v1800_v0  ;;  %p1772_p8 = scmp.ne.s32.totalorder %s1430_s16, %s1771_s17  ;;  %p1777_p10 = scmp.lt.s32.totalorder %s1771_s17, %s1771_s17 }
  0x20   :  { %p1778_p11 = por %p1777_p10, %p1776_p9 }
  0x22   :  { %p1779_p12 = pnand %p1778_p11, %p1772_p8 }
  0xf0   :  { %v120_v7 = vpop.f32.mrb[0].mxu0 }
  0xf1   :  { %v134_v8 = vadd.f32 %v1444_v6, %v120_v7  ;;  %v1552_v9 = vpop.f32.mrb[1].mxu0 }
  0xf2   :  { %v123_v10 = vpop.f32.mrb[2].mxu0 }
  0xf3   :  { %v1938_v11 = vpack.c.bf16 %v134_v8, %v134_v8  ;;  %v135_v12 = vadd.f32 %v1444_v6, %v123_v10  ;;  %v1553_v13 = vpop.f32.mrb[3].mxu0  ;;  %v136_v17 = vmul.f32 0.35355338, %v134_v8 }
  0xf5   :  { %165 = vrot.lane.b32.xlu0 %v1938_v11, %s1802_s0  ;;  %v1941_v14 = vpack.c.bf16 %v135_v12, %v135_v12  ;;  %v1947_v20 = vpack.c.bf16 %v136_v17, %v136_v17  ;;  %v137_v21 = vmul.f32 0.35355338, %v135_v12 }
  0xf7   :  { %v1954_v22 = vpack.c.bf16 %v137_v21, %v137_v21 }
  0xf9   :  { %215 = vrot.lane.b32.xlu0 %v1941_v14, %s1802_s0 }
 0x167   :  { %v166_v15 = vpop.permute.xlu0 %165 }
 0x168   :  { %v172_v16 = vsel %vm167_vm2, %v166_v15, 0 }
 0x169   :  { %1555 = vmatpush3.bf16.xpose.msra.mxu1 %v172_v16 }
 0x16a   :  { %1566 = vmatprep.subr.bf16.mxu1 %v1800_v0 }
 0x16b   :  { %v216_v18 = vpop.permute.xlu0 %215 }
 0x16c   :  { %v221_v19 = vsel %vm167_vm2, %v216_v18, 0 }
 0x16d   :  { %1561 = vmatpush3.bf16.xpose.msra.mxu0 %v221_v19 }
 0x16e   :  { %1572 = vmatprep.subr.bf16.mxu0 %v1800_v0 }
 0x170   :  { %1557 = vmatmul.mubr.msk.bf16.vlgmr.msra.gmra.mrb[0].mxu1 %vm167_vm2, %v1947_v20 }
 0x171   :  { %1568 = vmatprep.mubr.msk.bf16.mxu1 %vm1801_vm0, %v1800_v0 }
 0x174   :  { %1563 = vmatmul.mubr.msk.bf16.vlgmr.msra.gmra.mrb[4].mxu0 %vm167_vm2, %v1954_v22 }
 0x175   :  { %1574 = vmatprep.mubr.msk.bf16.mxu0 %vm1801_vm0, %v1800_v0 }
 0x243   :  { %v208_v31 = vpop.f32.mrb[0].mxu1 }
 0x244   :  { %v209_v32 = vadd.f32 %v208_v31, %v1966_v29  ;;  %v1558_v33 = vpop.f32.mrb[1].mxu1 }
 0x245   :  { %v211_v35 = vpop.f32.mrb[2].mxu1 }
 0x246   :  { %v1559_v36 = vpop.f32.mrb[3].mxu1  ;;  %v263_v37 = vsel %vm167_vm2, %v209_v32, -inf }
 0x247   :  { %264 = vmax.xlane.f32.xlu1 %v263_v37  ;;  %v257_v38 = vpop.f32.mrb[4].mxu0 }
 0x248   :  { %v258_v39 = vadd.f32 %v257_v38, %v1969_v34  ;;  %v1564_v40 = vpop.f32.mrb[5].mxu0 }
 0x249   :  { %v260_v41 = vpop.f32.mrb[6].mxu0 }
 0x24a   :  { %v1565_v42 = vpop.f32.mrb[7].mxu0  ;;  %v266_v43 = vsel %vm167_vm2, %v258_v39, -inf }
 0x24b   :  { %267 = vmax.xlane.f32.xlu1 %v266_v43 }
 0x25c   :  { %287 = vrot.lane.b32.xlu1 %v1938_v11, %s1798_s23 }
 0x260   :  { %336 = vrot.lane.b32.xlu1 %v1941_v14, %s1798_s23  ;;  %s1805_s23 = smov 56  }
 0x264   :  { %391 = vrot.lane.b32.xlu1 %v1938_v11, %s1803_s1 }
 0x2d4   :  { %v265_v44 = vpop.xlane.xlu1 %264 }
 0x2d5   :  { %v269_v45 = vsub.f32 %v209_v32, %v265_v44 }
 0x2d7   :  { %v271_v46 = vmul.f32 1.442695, %v269_v45 }
 0x2d8   :  { %v268_v47 = vpop.xlane.xlu1 %267 }
 0x2d9   :  { %1709 = vpow2.f32 %v271_v46  ;;  %v270_v48 = vsub.f32 %v258_v39, %v268_v47 }
 0x2db   :  { %v273_v49 = vmul.f32 1.442695, %v270_v48 }
 0x2dc   :  { %v288_v50 = vpop.permute.xlu1 %287 }
 0x2dd   :  { %1711 = vpow2.f32 %v273_v49  ;;  %v294_v51 = vsel %vm292_vm3, %v288_v50, 0 }
 0x2de   :  { %1567 = vmatpush3.bf16.msra.mxu1 %v294_v51 }
 0x2df   :  { %1578 = vmatprep.subr.bf16.mxu1 %v1800_v0 }
 0x2e0   :  { %v337_v52 = vpop.permute.xlu1 %336 }
 0x2e1   :  { %v342_v53 = vsel %vm292_vm3, %v337_v52, 0 }
 0x2e2   :  { %1573 = vmatpush3.bf16.msra.mxu0 %v342_v53 }
 0x2e3   :  { %v1710_v54 = vpop.eup %1709  ;;  %1584 = vmatprep.subr.bf16.mxu0 %v1800_v0 }
 0x2e4   :  { %v275_v55 = vsel %vm167_vm2, %v1710_v54, 0.0  ;;  %v392_v58 = vpop.permute.xlu1 %391 }
 0x2e5   :  { %276 = vadd.xlane.f32.xlu0 %v275_v55  ;;  %v397_v2 = vsel %vm167_vm2, %v392_v58, 0 }
 0x2e7   :  { %v1712_v56 = vpop.eup %1711 }
 0x2e8   :  { %v278_v57 = vsel %vm167_vm2, %v1712_v56, 0.0 }
 0x2e9   :  { %279 = vadd.xlane.f32.xlu1 %v278_v57 }
 0x2fa   :  { %441 = vrot.lane.b32.xlu1 %v1941_v14, %s1803_s1 }
 0x2fb   :  { %389 = vrot.lane.b32.xlu0 %v1947_v20, %s1804_s22 }
 0x2fe   :  { %439 = vrot.lane.b32.xlu1 %v1954_v22, %s1804_s22 }
 0x372   :  { %v277_v59 = vpop.xlane.xlu0 %276 }
 0x373   :  { %1713 = vrcp.f32 %v277_v59 }
 0x376   :  { %v280_v60 = vpop.xlane.xlu1 %279  ;;  %v390_v9 = vpop.permute.xlu0 %389 }
 0x377   :  { %1715 = vrcp.f32 %v280_v60 }
 0x37a   :  { %v442_v6 = vpop.permute.xlu1 %441 }
 0x37b   :  { %v447_v8 = vsel %vm167_vm2, %v442_v6, 0 }
 0x37d   :  { %v1714_v61 = vpop.eup %1713 }
 0x37e   :  { %v283_v62 = vmul.f32 %v1714_v61, %v1710_v54  ;;  %v440_v10 = vpop.permute.xlu1 %439 }
 0x380   :  { %v285_v63 = vpack.c.bf16 %v283_v62, %v283_v62 }
 0x381   :  { %v1716_v1 = vpop.eup %1715 }
 0x382   :  { %v284_v5 = vmul.f32 %v1716_v1, %v1712_v56  ;;  %1569 = vmatmul.mubr.msk.bf16.vlgmr.msra.gmra.mrb[4].mxu1 %vm167_vm2, %v285_v63 }
 0x383   :  { %1579 = vmatpush3.bf16.xpose.msra.mxu1 %v397_v2  ;;  %1580 = vmatprep.mubr.msk.bf16.mxu1 %vm1801_vm0, %v1800_v0 }
 0x384   :  { %v286_v7 = vpack.c.bf16 %v284_v5, %v284_v5  ;;  %1590 = vmatprep.subr.bf16.mxu1 %v1800_v0 }
 0x386   :  { %1575 = vmatmul.mubr.msk.bf16.vlgmr.msra.gmra.mrb[8].mxu0 %vm167_vm2, %v286_v7 }
 0x387   :  { %1585 = vmatpush3.bf16.xpose.msra.mxu0 %v447_v8  ;;  %1586 = vmatprep.mubr.msk.bf16.mxu0 %vm1801_vm0, %v1800_v0 }
 0x388   :  { %1596 = vmatprep.subr.bf16.mxu0 %v1800_v0 }
 0x38a   :  { %1581 = vmatmul.mubr.msk.bf16.vlgmr.msra.gmra.mrb[8].mxu1 %vm167_vm2, %v390_v9 }
 0x38b   :  { %1592 = vmatprep.mubr.msk.bf16.mxu1 %vm1801_vm0, %v1800_v0 }
 0x38e   :  { %1587 = vmatmul.mubr.msk.bf16.vlgmr.msra.gmra.mrb[12].mxu0 %vm167_vm2, %v440_v10 }
 0x38f   :  { %1598 = vmatprep.mubr.msk.bf16.mxu0 %vm1801_vm0, %v1800_v0 }
 0x455   :  { %v330_v12 = vpop.f32.mrb[4].mxu1 }
 0x456   :  { %v384_v13 = vpack.c.bf16 %v330_v12, %v330_v12  ;;  %v1570_v15 = vpop.f32.mrb[5].mxu1 }
 0x457   :  { %v333_v16 = vpop.f32.mrb[6].mxu1 }
 0x458   :  { %387 = vst.msk [vmem:[#allocation2] sm:$0xf] %vm386_vm4, %v384_v13  ;;  %v1571_v17 = vpop.f32.mrb[7].mxu1 }
 0x459   :  { %v378_v18 = vpop.f32.mrb[8].mxu0 }
 0x45a   :  { %v385_v19 = vpack.c.bf16 %v378_v18, %v378_v18  ;;  %v1576_v21 = vpop.f32.mrb[9].mxu0 }
 0x45b   :  { %v381_v23 = vpop.f32.mrb[10].mxu0 }
 0x45c   :  { %388 = vst.msk [vmem:[#allocation2 + $0x4] sm:$0xf] %vm386_vm4, %v385_v19  ;;  %v1577_v24 = vpop.f32.mrb[11].mxu0 }
 0x45d   :  { %v433_v25 = vpop.f32.mrb[8].mxu1 }
 0x45e   :  { %v434_v26 = vadd.f32 %v433_v25, %v1966_v29  ;;  %v1582_v27 = vpop.f32.mrb[9].mxu1 }
 0x45f   :  { %v436_v28 = vpop.f32.mrb[10].mxu1 }
 0x460   :  { %v1583_v30 = vpop.f32.mrb[11].mxu1  ;;  %v489_v31 = vsel %vm167_vm2, %v434_v26, -inf }
 0x461   :  { %490 = vmax.xlane.f32.xlu1 %v489_v31  ;;  %v483_v32 = vpop.f32.mrb[12].mxu0 }
 0x462   :  { %v484_v33 = vadd.f32 %v483_v32, %v1969_v34  ;;  %v1588_v35 = vpop.f32.mrb[13].mxu0 }
 0x463   :  { %v486_v36 = vpop.f32.mrb[14].mxu0 }
 0x464   :  { %v1589_v37 = vpop.f32.mrb[15].mxu0  ;;  %v492_v38 = vsel %vm167_vm2, %v484_v33, -inf }
 0x465   :  { %493 = vmax.xlane.f32.xlu0 %v492_v38 }
 0x472   :  { %513 = vrot.lane.b32.xlu1 %v1938_v11, %s1805_s23 }
 0x476   :  { %628 = vrot.lane.b32.xlu1 %v1938_v11, %s1806_s24 }
 0x47b   :  { %561 = vrot.lane.b32.xlu0 %v1941_v14, %s1805_s23 }
 0x47f   :  { %626 = vrot.lane.b32.xlu0 %v1947_v20, %s1807_s25 }
 0x4ee   :  { %v491_v39 = vpop.xlane.xlu1 %490 }
 0x4ef   :  { %v495_v40 = vsub.f32 %v434_v26, %v491_v39 }
 0x4f1   :  { %v497_v41 = vmul.f32 1.442695, %v495_v40 }
 0x4f2   :  { %v514_v42 = vpop.permute.xlu1 %513  ;;  %v494_v43 = vpop.xlane.xlu0 %493 }
 0x4f3   :  { %1717 = vpow2.f32 %v497_v41  ;;  %v519_v44 = vsel %vm292_vm3, %v514_v42, 0  ;;  %v496_v45 = vsub.f32 %v484_v33, %v494_v43 }
 0x4f4   :  { %1591 = vmatpush3.bf16.msra.mxu1 %v519_v44 }
 0x4f5   :  { %v499_v46 = vmul.f32 1.442695, %v496_v45  ;;  %1602 = vmatprep.subr.bf16.mxu1 %v1800_v0 }
 0x4f6   :  { %v562_v47 = vpop.permute.xlu0 %561  ;;  %v629_v53 = vpop.permute.xlu1 %628 }
 0x4f7   :  { %1719 = vpow2.f32 %v499_v46  ;;  %v567_v48 = vsel %vm292_vm3, %v562_v47, 0  ;;  %v634_v60 = vsel %vm167_vm2, %v629_v53, 0 }
 0x4f8   :  { %1597 = vmatpush3.bf16.msra.mxu0 %v567_v48 }
 0x4f9   :  { %1608 = vmatprep.subr.bf16.mxu0 %v1800_v0 }
 0x4fa   :  { %v627_v2 = vpop.permute.xlu0 %626 }
 0x4fd   :  { %v1718_v49 = vpop.eup %1717 }
 0x4fe   :  { %v501_v50 = vsel %vm167_vm2, %v1718_v49, 0.0 }
 0x4ff   :  { %502 = vadd.xlane.f32.xlu1 %v501_v50 }
 0x501   :  { %v1720_v51 = vpop.eup %1719 }
 0x502   :  { %v504_v52 = vsel %vm167_vm2, %v1720_v51, 0.0 }
 0x503   :  { %505 = vadd.xlane.f32.xlu1 %v504_v52 }
 0x514   :  { %678 = vrot.lane.b32.xlu1 %v1941_v14, %s1806_s24 }
 0x518   :  { %676 = vrot.lane.b32.xlu1 %v1954_v22, %s1807_s25 }
 0x58c   :  { %v503_v54 = vpop.xlane.xlu1 %502 }
 0x58d   :  { %1721 = vrcp.f32 %v503_v54 }
 0x590   :  { %v506_v55 = vpop.xlane.xlu1 %505 }
 0x591   :  { %1723 = vrcp.f32 %v506_v55 }
 0x594   :  { %v679_v62 = vpop.permute.xlu1 %678 }
 0x595   :  { %v684_v1 = vsel %vm167_vm2, %v679_v62, 0 }
 0x597   :  { %v1722_v56 = vpop.eup %1721 }
 0x598   :  { %v509_v57 = vmul.f32 %v1722_v56, %v1718_v49  ;;  %v677_v5 = vpop.permute.xlu1 %676 }
 0x59a   :  { %v511_v58 = vpack.c.bf16 %v509_v57, %v509_v57 }
 0x59b   :  { %v1724_v59 = vpop.eup %1723 }
 0x59c   :  { %v510_v61 = vmul.f32 %v1724_v59, %v1720_v51  ;;  %1593 = vmatmul.mubr.msk.bf16.vlgmr.msra.gmra.mrb[12].mxu1 %vm167_vm2, %v511_v58 }
 0x59d   :  { %1603 = vmatpush3.bf16.xpose.msra.mxu1 %v634_v60  ;;  %1604 = vmatprep.mubr.msk.bf16.mxu1 %vm1801_vm0, %v1800_v0 }
 0x59e   :  { %v512_v63 = vpack.c.bf16 %v510_v61, %v510_v61  ;;  %1614 = vmatprep.subr.bf16.mxu1 %v1800_v0 }
 0x5a0   :  { %1599 = vmatmul.mubr.msk.bf16.vlgmr.msra.gmra.mrb[16].mxu0 %vm167_vm2, %v512_v63 }
 0x5a1   :  { %1609 = vmatpush3.bf16.xpose.msra.mxu0 %v684_v1  ;;  %1610 = vmatprep.mubr.msk.bf16.mxu0 %vm1801_vm0, %v1800_v0 }
 0x5a2   :  { %1620 = vmatprep.subr.bf16.mxu0 %v1800_v0 }
 0x5a4   :  { %1605 = vmatmul.mubr.msk.bf16.vlgmr.msra.gmra.mrb[16].mxu1 %vm167_vm2, %v627_v2 }
 0x5a5   :  { %1616 = vmatprep.mubr.msk.bf16.mxu1 %vm1801_vm0, %v1800_v0 }
 0x5a8   :  { %1611 = vmatmul.mubr.msk.bf16.vlgmr.msra.gmra.mrb[20].mxu0 %vm167_vm2, %v677_v5 }
 0x5a9   :  { %1622 = vmatprep.mubr.msk.bf16.mxu0 %vm1801_vm0, %v1800_v0 }
 0x66f   :  { %v2036_v6 = vpop.f32.mrb[12].mxu1 }
 0x670   :  { %v1594_v7 = vpop.f32.mrb[13].mxu1 }
 0x671   :  { %v558_v8 = vpop.f32.mrb[14].mxu1 }
 0x672   :  { %v1595_v9 = vpop.f32.mrb[15].mxu1 }
 0x673   :  { %v2038_v10 = vpop.f32.mrb[16].mxu0 }
 0x674   :  { %v1600_v12 = vpop.f32.mrb[17].mxu0 }
 0x675   :  { %v606_v13 = vpop.f32.mrb[18].mxu0 }
 0x676   :  { %v1601_v15 = vpop.f32.mrb[19].mxu0 }
 0x677   :  { %v670_v16 = vpop.f32.mrb[16].mxu1 }
 0x678   :  { %v671_v17 = vadd.f32 %v670_v16, %v1966_v29  ;;  %v1606_v18 = vpop.f32.mrb[17].mxu1 }
 0x679   :  { %v673_v19 = vpop.f32.mrb[18].mxu1 }
 0x67a   :  { %v1607_v21 = vpop.f32.mrb[19].mxu1  ;;  %v726_v23 = vsel %vm167_vm2, %v671_v17, -inf }
 0x67b   :  { %727 = vmax.xlane.f32.xlu0 %v726_v23  ;;  %v720_v24 = vpop.f32.mrb[20].mxu0  ;;  %v1495_v23 = vpack.c.bf16 %v2038_v10, %v2038_v10 }
 0x67c   :  { %v721_v25 = vadd.f32 %v720_v24, %v1969_v34  ;;  %v1612_v26 = vpop.f32.mrb[21].mxu0 }
 0x67d   :  { %v723_v27 = vpop.f32.mrb[22].mxu0 }
 0x67e   :  { %v1613_v28 = vpop.f32.mrb[23].mxu0  ;;  %v729_v30 = vsel %vm167_vm2, %v721_v25, -inf }
 0x67f   :  { %730 = vmax.xlane.f32.xlu1 %v729_v30 }
 0x690   :  { %750 = vrot.lane.b32.xlu1 %v1938_v11, %s1808_s26 }
 0x694   :  { %865 = vrot.lane.b32.xlu1 %v1938_v11, %s1809_s27 }
 0x698   :  { %915 = vrot.lane.b32.xlu1 %v1941_v14, %s1809_s27 }
 0x69c   :  { %913 = vrot.lane.b32.xlu1 %v1954_v22, %s1810_s28 }
 0x708   :  { %v728_v31 = vpop.xlane.xlu0 %727 }
 0x709   :  { %v732_v32 = vsub.f32 %v671_v17, %v728_v31 }
 0x70b   :  { %v734_v33 = vmul.f32 1.442695, %v732_v32 }
 0x70c   :  { %v731_v35 = vpop.xlane.xlu1 %730 }
 0x70d   :  { %1725 = vpow2.f32 %v734_v33  ;;  %v733_v36 = vsub.f32 %v721_v25, %v731_v35 }
 0x70f   :  { %v736_v37 = vmul.f32 1.442695, %v733_v36 }
 0x710   :  { %v751_v38 = vpop.permute.xlu1 %750 }
 0x711   :  { %1727 = vpow2.f32 %v736_v37  ;;  %v756_v39 = vsel %vm292_vm3, %v751_v38, 0 }
 0x712   :  { %1615 = vmatpush3.bf16.msra.mxu1 %v756_v39 }
 0x713   :  { %1626 = vmatprep.subr.bf16.mxu1 %v1800_v0 }
 0x714   :  { %v866_v48 = vpop.permute.xlu1 %865 }
 0x715   :  { %v871_v52 = vsel %vm167_vm2, %v866_v48, 0  ;;  %v1700_v48 = vld [vmem:[%s2178_s4] sm:$0xff]  }
 0x717   :  { %v1726_v40 = vpop.eup %1725 }
 0x718   :  { %v738_v41 = vsel %vm167_vm2, %v1726_v40, 0.0 }
 0x719   :  { %739 = vadd.xlane.f32.xlu0 %v738_v41 }
 0x71b   :  { %v1728_v42 = vpop.eup %1727 }
 0x71c   :  { %v741_v22 = vsel %vm167_vm2, %v1728_v42, 0.0 }
 0x71d   :  { %742 = vadd.xlane.f32.xlu0 %v741_v22 }
 0x733   :  { %798 = vrot.lane.b32.xlu0 %v1941_v14, %s1808_s26 }
 0x737   :  { %863 = vrot.lane.b32.xlu0 %v1947_v20, %s1810_s28  ;;  %v916_v20 = vpop.permute.xlu1 %915 }
 0x738   :  { %v921_v55 = vsel %vm167_vm2, %v916_v20, 0 }
 0x73b   :  { %v914_v57 = vpop.permute.xlu1 %913 }
 0x7a6   :  { %v740_v43 = vpop.xlane.xlu0 %739 }
 0x7a7   :  { %1729 = vrcp.f32 %v740_v43 }
 0x7aa   :  { %v743_v44 = vpop.xlane.xlu0 %742 }
 0x7ab   :  { %1731 = vrcp.f32 %v743_v44 }
 0x7ae   :  { %v799_v45 = vpop.permute.xlu0 %798 }
 0x7af   :  { %v804_v46 = vsel %vm292_vm3, %v799_v45, 0 }
 0x7b0   :  { %1621 = vmatpush3.bf16.msra.mxu0 %v804_v46 }
 0x7b1   :  { %v1730_v47 = vpop.eup %1729  ;;  %1632 = vmatprep.subr.bf16.mxu0 %v1800_v0 }
 0x7b2   :  { %v746_v49 = vmul.f32 %v1730_v47, %v1726_v40  ;;  %v864_v56 = vpop.permute.xlu0 %863 }
 0x7b4   :  { %v748_v50 = vpack.c.bf16 %v746_v49, %v746_v49  ;;  %v1701_v49 = vld [vmem:[%s2178_s4 + $0x8] sm:$0xff]  }
 0x7b5   :  { %v1732_v51 = vpop.eup %1731 }
 0x7b6   :  { %v747_v53 = vmul.f32 %v1732_v51, %v1728_v42  ;;  %1617 = vmatmul.mubr.msk.bf16.vlgmr.msra.gmra.mrb[20].mxu1 %vm167_vm2, %v748_v50 }
 0x7b7   :  { %1627 = vmatpush3.bf16.xpose.msra.mxu1 %v871_v52  ;;  %1628 = vmatprep.mubr.msk.bf16.mxu1 %vm1801_vm0, %v1800_v0 }
 0x7b8   :  { %v749_v54 = vpack.c.bf16 %v747_v53, %v747_v53  ;;  %1638 = vmatprep.subr.bf16.mxu1 %v1800_v0 }
 0x7ba   :  { %1623 = vmatmul.mubr.msk.bf16.vlgmr.msra.gmra.mrb[24].mxu0 %vm167_vm2, %v749_v54 }
 0x7bb   :  { %1633 = vmatpush3.bf16.xpose.msra.mxu0 %v921_v55  ;;  %1634 = vmatprep.mubr.msk.bf16.mxu0 %vm1801_vm0, %v1800_v0 }
 0x7bc   :  { %1644 = vmatprep.subr.bf16.mxu0 %v1800_v0 }
 0x7be   :  { %1629 = vmatmul.mubr.msk.bf16.vlgmr.msra.gmra.mrb[24].mxu1 %vm167_vm2, %v864_v56 }
 0x7bf   :  { %1640 = vmatprep.mubr.msk.bf16.mxu1 %vm1801_vm0, %v1800_v0 }
 0x7c2   :  { %1635 = vmatmul.mubr.msk.bf16.vlgmr.msra.gmra.mrb[28].mxu0 %vm167_vm2, %v914_v57 }
 0x7c3   :  { %1646 = vmatprep.mubr.msk.bf16.mxu0 %vm1801_vm0, %v1800_v0 }
 0x889   :  { %v792_v58 = vpop.f32.mrb[20].mxu1 }
 0x88a   :  { %v1618_v59 = vpop.f32.mrb[21].mxu1  ;;  %v1496_v38 = vpack.c.bf16 %v792_v58, %v792_v58 }
 0x88b   :  { %v795_v60 = vpop.f32.mrb[22].mxu1 }
 0x88c   :  { %v1619_v61 = vpop.f32.mrb[23].mxu1 }
 0x88d   :  { %v840_v62 = vpop.f32.mrb[24].mxu0 }
 0x88e   :  { %v1624_v63 = vpop.f32.mrb[25].mxu0 }
 0x88f   :  { %v843_v1 = vpop.f32.mrb[26].mxu0 }
 0x890   :  { %v1625_v2 = vpop.f32.mrb[27].mxu0 }
 0x891   :  { %v907_v5 = vpop.f32.mrb[24].mxu1 }
 0x892   :  { %v908_v7 = vadd.f32 %v907_v5, %v1966_v29  ;;  %v1630_v8 = vpop.f32.mrb[25].mxu1  ;;  %v1494_v29 = vpack.c.bf16 %v2036_v6, %v2036_v6 }
 0x893   :  { %v910_v9 = vpop.f32.mrb[26].mxu1 }
 0x894   :  { %v1631_v12 = vpop.f32.mrb[27].mxu1  ;;  %v963_v13 = vsel %vm167_vm2, %v908_v7, -inf }
 0x895   :  { %964 = vmax.xlane.f32.xlu0 %v963_v13  ;;  %v957_v15 = vpop.f32.mrb[28].mxu0 }
 0x896   :  { %v958_v16 = vadd.f32 %v957_v15, %v1969_v34  ;;  %v1636_v17 = vpop.f32.mrb[29].mxu0  ;;  %v1497_v34 = vpack.c.bf16 %v840_v62, %v840_v62  ;;  %v1471_v62 = vld [vmem:[%s2179_s5] ss:$0 sm:$0xff] }
 0x897   :  { %v960_v18 = vpop.f32.mrb[30].mxu0 }
 0x898   :  { %v1637_v19 = vpop.f32.mrb[31].mxu0  ;;  %v966_v21 = vsel %vm167_vm2, %v958_v16, -inf }
 0x899   :  { %967 = vmax.xlane.f32.xlu1 %v966_v21 }
 0x8aa   :  { %987 = vrot.lane.b32.xlu1 %v1938_v11, %s1811_s29 }
 0x8ae   :  { %617 = vrot.lane.b32.xlu1 %v1494_v29, %s1812_s8 }
 0x8b2   :  { %619 = vrot.lane.b32.xlu1 %v1495_v23, %s1812_s8 }
 0x8b6   :  { %856 = vrot.lane.b32.xlu1 %v1497_v34, %s1813_s30 }
 0x922   :  { %v965_v24 = vpop.xlane.xlu0 %964 }
 0x923   :  { %v969_v25 = vsub.f32 %v908_v7, %v965_v24 }
 0x925   :  { %v971_v26 = vmul.f32 1.442695, %v969_v25  ;;  %v1703_v25 = vld [vmem:[#allocation3] sm:$0xff]  }
 0x926   :  { %v968_v27 = vpop.xlane.xlu1 %967 }
 0x927   :  { %1733 = vpow2.f32 %v971_v26  ;;  %v970_v11 = vsub.f32 %v958_v16, %v968_v27  ;;  %v1705_v26 = vld [vmem:[%s2184_s10] sm:$0xff]   ;;  %v1706_v27 = vld [vmem:[%s2184_s10 + $0x8] sm:$0xff]  }
 0x929   :  { %v973_v28 = vmul.f32 1.442695, %v970_v11 }
 0x92a   :  { %v988_v30 = vpop.permute.xlu1 %987 }
 0x92b   :  { %1735 = vpow2.f32 %v973_v28  ;;  %v993_v6 = vsel %vm292_vm3, %v988_v30, 0 }
 0x92c   :  { %1639 = vmatpush3.bf16.msra.mxu1 %v993_v6 }
 0x92d   :  { %1650 = vmatprep.subr.bf16.mxu1 %v1800_v0 }
 0x92e   :  { %v618_v10 = vpop.permute.xlu1 %617 }
 0x92f   :  { %624 = vst.msk [vmem:[#allocation2] sm:$0xf] %vm623_vm5, %v618_v10 }
 0x931   :  { %v1734_v31 = vpop.eup %1733 }
 0x932   :  { %v620_v32 = vpop.permute.xlu1 %619  ;;  %v975_v33 = vsel %vm167_vm2, %v1734_v31, 0.0 }
 0x933   :  { %625 = vst.msk [vmem:[#allocation2 + $0x4] sm:$0xf] %vm623_vm5, %v620_v32  ;;  %976 = vadd.xlane.f32.xlu0 %v975_v33 }
 0x935   :  { %v1736_v35 = vpop.eup %1735 }
 0x936   :  { %v857_v36 = vpop.permute.xlu1 %856  ;;  %v978_v37 = vsel %vm167_vm2, %v1736_v35, 0.0 }
 0x937   :  { %862 = vst.msk [vmem:[#allocation2 + $0x4] sm:$0xf] %vm860_vm6, %v857_v36  ;;  %979 = vadd.xlane.f32.xlu0 %v978_v37 }
 0x94d   :  { %1035 = vrot.lane.b32.xlu0 %v1941_v14, %s1811_s29 }
 0x951   :  { %854 = vrot.lane.b32.xlu0 %v1496_v38, %s1813_s30 }
 0x9c0   :  { %v977_v39 = vpop.xlane.xlu0 %976 }
 0x9c1   :  { %1737 = vrcp.f32 %v977_v39  ;;  %v1477_v39 = vld [vmem:[%s2181_s7] ss:$0 sm:$0xff] }
 0x9c4   :  { %v980_v40 = vpop.xlane.xlu0 %979 }
 0x9c5   :  { %1739 = vrcp.f32 %v980_v40 }
 0x9c8   :  { %v1036_v41 = vpop.permute.xlu0 %1035 }
 0x9c9   :  { %v1041_v42 = vsel %vm292_vm3, %v1036_v41, 0 }
 0x9ca   :  { %1645 = vmatpush3.bf16.msra.mxu0 %v1041_v42 }
 0x9cb   :  { %v1738_v22 = vpop.eup %1737  ;;  %1658 = vmatprep.subr.bf16.mxu0 %v1800_v0 }
 0x9cc   :  { %v983_v43 = vmul.f32 %v1738_v22, %v1734_v31  ;;  %v855_v44 = vpop.permute.xlu0 %854 }
 0x9cd   :  { %861 = vst.msk [vmem:[#allocation2] sm:$0xf] %vm860_vm6, %v855_v44  ;;  %v1708_v44 = vld [vmem:[%s2184_s10 + $0x18] sm:$0xff]  }
 0x9ce   :  { %v985_v45 = vpack.c.bf16 %v983_v43, %v983_v43  ;;  %v1707_v43 = vld [vmem:[%s2184_s10 + $0x10] sm:$0xff]  }
 0x9cf   :  { %v1740_v46 = vpop.eup %1739 }
 0x9d0   :  { %v984_v14 = vmul.f32 %v1740_v46, %v1736_v35  ;;  %1641 = vmatmul.mubr.msk.bf16.vlgmr.msra.gmra.mrb[28].mxu1 %vm167_vm2, %v985_v45  ;;  %v1476_v35 = vld [vmem:[%s2180_s6] ss:$0 sm:$0xff] }
 0x9d1   :  { %1654 = vmatprep.mubr.msk.bf16.mxu1 %vm1801_vm0, %v1800_v0  ;;  %1651 = vmatpush3.bf16.msra.mxu1 %v1700_v48  ;;  %v1478_v45 = vld [vmem:[%s2183_s9] ss:$0 sm:$0xff] }
 0x9d2   :  { %v986_v47 = vpack.c.bf16 %v984_v14, %v984_v14  ;;  %1652 = vmatprep.subr.bf16.mxu1 %v1800_v0 }
 0x9d4   :  { %1647 = vmatmul.mubr.msk.bf16.vlgmr.msra.gmra.mrb[32].mxu0 %vm167_vm2, %v986_v47 }
 0x9d5   :  { %1662 = vmatprep.mubr.msk.bf16.mxu0 %vm1801_vm0, %v1800_v0  ;;  %1653 = vmatpush3.bf16.msra.mxu1 %v1701_v49 }
 0x9d6   :  { %1666 = vmatprep.subr.bf16.mxu1 %v1800_v0  ;;  %1659 = vmatpush3.bf16.msra.mxu0 %v1703_v25  ;;  %v1489_v25 = vld [vmem:[%s2187_s13] ss:$0 sm:$0xff] }
 0x9d7   :  { %1660 = vmatprep.subr.bf16.mxu0 %v1800_v0 }
 0xaa3   :  { %v1029_v50 = vpop.f32.mrb[28].mxu1 }
 0xaa4   :  { %v1498_v51 = vpack.c.bf16 %v1029_v50, %v1029_v50  ;;  %v1642_v52 = vpop.f32.mrb[29].mxu1 }
 0xaa5   :  { %v1032_v53 = vpop.f32.mrb[30].mxu1 }
 0xaa6   :  { %1091 = vrot.lane.b32.xlu0 %v1498_v51, %s1814_s18  ;;  %v1643_v20 = vpop.f32.mrb[31].mxu1 }
 0xaa7   :  { %v1077_v54 = vpop.f32.mrb[32].mxu0 }
 0xaa8   :  { %v1499_v55 = vpack.c.bf16 %v1077_v54, %v1077_v54  ;;  %v1648_v56 = vpop.f32.mrb[33].mxu0 }
 0xaa9   :  { %v1080_v57 = vpop.f32.mrb[34].mxu0 }
 0xaaa   :  { %1093 = vrot.lane.b32.xlu1 %v1499_v55, %s1814_s18  ;;  %v1649_v58 = vpop.f32.mrb[35].mxu0 }
 0xb18   :  { %v1092_v59 = vpop.permute.xlu0 %1091 }
 0xb19   :  { %1098 = vst.msk [vmem:[#allocation2] sm:$0xf] %vm1097_vm7, %v1092_v59 }
 0xb1c   :  { %v1094_v60 = vpop.permute.xlu1 %1093 }
 0xb1d   :  { %1099 = vst.msk [vmem:[#allocation2 + $0x4] sm:$0xf] %vm1097_vm7, %v1094_v60 }
 0xb24   :  { %v1702_v61 = vld [vmem:[#allocation2] sm:$0xff]  }
 0xb25   :  { %1655 = vmatmul.mubr.msk.bf16.vlgmr.msra.gmra.mrb[32].mxu1 %vm82_vm1, %v1702_v61 }
 0xb26   :  { %1674 = vmatprep.mubr.msk.bf16.mxu1 %vm1801_vm0, %v1800_v0  ;;  %1667 = vmatpush3.bf16.msra.mxu1 %v1705_v26 }
 0xb27   :  { %1668 = vmatprep.subr.bf16.mxu1 %v1800_v0 }
 0xb2a   :  { %1669 = vmatpush3.bf16.msra.mxu1 %v1706_v27 }
 0xb2b   :  { %1670 = vmatprep.subr.bf16.mxu1 %v1800_v0 }
 0xb2e   :  { %1671 = vmatpush3.bf16.msra.mxu1 %v1707_v43 }
 0xb2f   :  { %1672 = vmatprep.subr.bf16.mxu1 %v1800_v0  ;;  %v1482_v0 = vld [vmem:[%s2185_s11] ss:$0 sm:$0xff] }
 0xb32   :  { %1673 = vmatpush3.bf16.msra.mxu1 %v1708_v44 }
 0xbf8   :  { %v1167_v63 = vpop.f32.mrb[32].mxu1 }
 0xbf9   :  { %v1168_v1 = vadd.f32 %v1471_v62, %v1167_v63  ;;  %v1656_v2 = vpop.f32.mrb[33].mxu1 }
 0xbfa   :  { %v1170_v5 = vpop.f32.mrb[34].mxu1 }
 0xbfb   :  { %v1171_v7 = vadd.f32 %v1471_v62, %v1170_v5  ;;  %v1657_v8 = vpop.f32.mrb[35].mxu1  ;;  %v1174_v9 = vadd.f32 %v1168_v1, %v1921_v3 }
 0xbfd   :  { %v1178_v12 = vsel %vm82_vm1, %v1174_v9, 0.0  ;;  %v1175_v13 = vadd.f32 %v1171_v7, %v1926_v4  ;;  %v1704_v4 = vld [vmem:[#allocation3 + $0x8] sm:$0xff]  }
 0xbfe   :  { %1179 = vadd.xlane.f32.xlu0 %v1178_v12  ;;  %1661 = vmatpush3.bf16.msra.mxu0 %v1704_v4 }
 0xbff   :  { %v1181_v15 = vsel %vm82_vm1, %v1175_v13, 0.0 }
 0xc00   :  { %1182 = vadd.xlane.f32.xlu1 %v1181_v15 }
 0xc8b   :  { %v1180_v16 = vpop.xlane.xlu0 %1179 }
 0xc8c   :  { %v1185_v17 = vmul.f32 0.03125, %v1180_v16 }
 0xc8d   :  { %v1183_v18 = vpop.xlane.xlu1 %1182 }
 0xc8e   :  { %v1187_v19 = vsub.f32 %v1174_v9, %v1185_v17  ;;  %v1186_v21 = vmul.f32 0.03125, %v1183_v18 }
 0xc90   :  { %v1188_v29 = vsub.f32 %v1175_v13, %v1186_v21  ;;  %v1189_v23 = vmul.f32 %v1187_v19, %v1187_v19 }
 0xc92   :  { %v1191_v34 = vsel %vm82_vm1, %v1189_v23, 0.0  ;;  %v1190_v24 = vmul.f32 %v1188_v29, %v1188_v29 }
 0xc93   :  { %1192 = vadd.xlane.f32.xlu0 %v1191_v34  ;;  %v1488_v34 = vld [vmem:[%s2186_s12] ss:$0 sm:$0xff] }
 0xc94   :  { %v1194_v3 = vsel %vm82_vm1, %v1190_v24, 0.0 }
 0xc97   :  { %1195 = vadd.xlane.f32.xlu0 %v1194_v3 }
 0xd20   :  { %v1193_v11 = vpop.xlane.xlu0 %1192 }
 0xd21   :  { %v1197_v28 = vmul.f32 0.03125, %v1193_v11 }
 0xd23   :  { %v1199_v30 = vadd.f32 1e-06, %v1197_v28 }
 0xd24   :  { %v1196_v6 = vpop.xlane.xlu0 %1195 }
 0xd25   :  { %1741 = vrsqrt.f32 %v1199_v30  ;;  %v1198_v10 = vmul.f32 0.03125, %v1196_v6 }
 0xd27   :  { %v1200_v31 = vadd.f32 1e-06, %v1198_v10 }
 0xd29   :  { %1743 = vrsqrt.f32 %v1200_v31 }
 0xd2f   :  { %v1742_v32 = vpop.eup %1741 }
 0xd30   :  { %v1203_v33 = vmul.f32 %v1742_v32, %v1187_v19 }
 0xd32   :  { %v1211_v37 = vmul.f32 %v1476_v35, %v1203_v33 }
 0xd33   :  { %v1744_v36 = vpop.eup %1743 }
 0xd34   :  { %v1204_v38 = vmul.f32 %v1744_v36, %v1188_v29  ;;  %v1219_v41 = vadd.f32 %v1477_v39, %v1211_v37 }
 0xd36   :  { %v1212_v40 = vmul.f32 %v1476_v35, %v1204_v38 }
 0xd38   :  { %v1220_v42 = vadd.f32 %v1477_v39, %v1212_v40 }
 0xd3a   :  { %v1221_v22 = vpack.c.bf16 %v1220_v42, %v1219_v41 }
 0xd3c   :  { %1663 = vmatmul.mubr.msk.bf16.vlgmr.msra.gmra.mrb[36].mxu0 %vm82_vm1, %v1221_v22 }
 0xe0f   :  { %v1282_v46 = vpop.f32.mrb[36].mxu0 }
 0xe10   :  { %v1283_v14 = vadd.f32 %v1478_v45, %v1282_v46  ;;  %v1664_v47 = vpop.f32.mrb[37].mxu0 }
 0xe11   :  { %v1285_v48 = vpop.f32.mrb[38].mxu0 }
 0xe12   :  { %v1286_v49 = vadd.f32 %v1478_v45, %v1285_v48  ;;  %v1665_v50 = vpop.f32.mrb[39].mxu0  ;;  %v1289_v51 = vmax.f32 %v1283_v14, 0.0 }
 0xe14   :  { %v1290_v52 = vmax.f32 %v1286_v49, 0.0 }
 0xe16   :  { %v1291_v53 = vpack.c.bf16 %v1290_v52, %v1289_v51 }
 0xe18   :  { %1675 = vmatmul.mubr.msk.bf16.vlgmr.msra.gmra.mrb[36].mxu1 %vm1331_vm8, %v1291_v53 }
 0xeeb   :  { %v1369_v20 = vpop.f32.mrb[36].mxu1 }
 0xeec   :  { %v1370_v54 = vadd.f32 %v1482_v0, %v1369_v20  ;;  %v1676_v55 = vpop.f32.mrb[37].mxu1 }
 0xeed   :  { %v1372_v56 = vpop.f32.mrb[38].mxu1 }
 0xeee   :  { %v1373_v57 = vadd.f32 %v1482_v0, %v1372_v56  ;;  %v1677_v58 = vpop.f32.mrb[39].mxu1  ;;  %v1376_v59 = vadd.f32 %v1370_v54, %v1219_v41 }
 0xef0   :  { %v1380_v60 = vsel %vm82_vm1, %v1376_v59, 0.0  ;;  %v1377_v61 = vadd.f32 %v1373_v57, %v1220_v42 }
 0xef1   :  { %1381 = vadd.xlane.f32.xlu1 %v1380_v60 }
 0xef2   :  { %v1383_v62 = vsel %vm82_vm1, %v1377_v61, 0.0 }
 0xef3   :  { %1384 = vadd.xlane.f32.xlu0 %v1383_v62 }
 0xf7e   :  { %v1382_v63 = vpop.xlane.xlu1 %1381 }
 0xf7f   :  { %v1386_v1 = vmul.f32 0.03125, %v1382_v63 }
 0xf80   :  { %v1385_v2 = vpop.xlane.xlu0 %1384 }
 0xf81   :  { %v1388_v5 = vsub.f32 %v1376_v59, %v1386_v1  ;;  %v1387_v7 = vmul.f32 0.03125, %v1385_v2 }
 0xf83   :  { %v1389_v8 = vsub.f32 %v1377_v61, %v1387_v7  ;;  %v1390_v9 = vmul.f32 %v1388_v5, %v1388_v5 }
 0xf85   :  { %v1392_v12 = vsel %vm82_vm1, %v1390_v9, 0.0  ;;  %v1391_v13 = vmul.f32 %v1389_v8, %v1389_v8 }
 0xf86   :  { %1393 = vadd.xlane.f32.xlu1 %v1392_v12 }
 0xf87   :  { %v1395_v15 = vsel %vm82_vm1, %v1391_v13, 0.0 }
 0xf88   :  { %1396 = vadd.xlane.f32.xlu0 %v1395_v15 }
0x1013   :  { %v1394_v16 = vpop.xlane.xlu1 %1393 }
0x1014   :  { %v1398_v17 = vmul.f32 0.03125, %v1394_v16 }
0x1015   :  { %v1397_v18 = vpop.xlane.xlu0 %1396 }
0x1016   :  { %v1400_v19 = vadd.f32 1e-06, %v1398_v17  ;;  %v1399_v21 = vmul.f32 0.03125, %v1397_v18 }
0x1018   :  { %1745 = vrsqrt.f32 %v1400_v19  ;;  %v1401_v29 = vadd.f32 1e-06, %v1399_v21 }
0x101a   :  { %1747 = vrsqrt.f32 %v1401_v29 }
0x1022   :  { %v1746_v23 = vpop.eup %1745 }
0x1023   :  { %v1404_v24 = vmul.f32 %v1746_v23, %v1388_v5 }
0x1024   :  { %v1748_v3 = vpop.eup %1747 }
0x1025   :  { %v1412_v4 = vmul.f32 %v1488_v34, %v1404_v24  ;;  %v1405_v26 = vmul.f32 %v1748_v3, %v1389_v8 }
0x1027   :  { %v1413_v27 = vmul.f32 %v1488_v34, %v1405_v26  ;;  %v1420_v11 = vadd.f32 %v1489_v25, %v1412_v4 }
0x1029   :  { %v1421_v28 = vadd.f32 %v1489_v25, %v1413_v27  ;;  %1422 = vst.msk [vmem:[#allocation6] sm:$0xff] %vm82_vm1, %v1420_v11 }
0x102b   :  { %1423 = vst.msk [vmem:[#allocation6 + $0x8] sm:$0xff] %vm82_vm1, %v1421_v28 }
0x102c   :  { %1782 = shalt.err (!%p1779_p12)
}
0x102d   :  { %s1783_s2 = scalar_lea.hbm %s2188_s14, 256 }
0x102e   :  { %p1784_p13 = scmp.ne.s32.totalorder %s2188_s14, %s1783_s2  ;;  %p1787_p0 = scmp.lt.u32.totalorder %s1783_s2, %s2188_s14 }
0x1030   :  { %p1789_p1 = pnand %p1787_p0, %p1784_p13 }
0x1032   :  { %1792 = shalt.err (!%p1789_p1)
}
0x1033   :  { %s1816_s3 = smov 128  }
0x1034   :  { %1435 = dma.vmem_to_hbm [thread:$0]  %s1430_s16, 256, %s2188_s14, [#allocation5], %s1816_s3, %s1816_s3, %s1812_s8  }
0x1035   :  { %1795 = dma.done.wait [#allocation5], 256  }
0x1036   :  { %1796 = vsyncadd [#allocation5], 4294967040 }
0x1037   :  { %1439 = vsyncpa [#allocation4], 1 }
0x1038   :  { %1440 = vsyncpa [#allocation5], 1 }

// kernel: tpu_custom_call.1
= control target key start
LH: loop header
LB: loop body
LE: loop exit
PB: predicated region body
PF: predicated region fallthrough
CT: control target
= control target key end

     0   :  { %19 = vsyncpa [#allocation4], 0  ;;  %s2174_s0 = inlined_call_operand.vmem [shape: f32[2,8,32], index: 0, kind: input, shape index: {}]   ;;  %s2175_s1 = inlined_call_operand.vmem [shape: f32[2,1,8], index: 1, kind: input, shape index: {}]   ;;  %s2176_s2 = inlined_call_operand.vmem [shape: bf16[32,96], index: 2, kind: input, shape index: {}]   ;;  %s2177_s3 = inlined_call_operand.vmem [shape: f32[1,96], index: 3, kind: input, shape index: {}]   ;;  %s2178_s4 = inlined_call_operand.vmem [shape: bf16[32,32], index: 4, kind: input, shape index: {}]   ;;  %s2179_s5 = inlined_call_operand.vmem [shape: f32[1,32], index: 5, kind: input, shape index: {}]   ;;  %s2180_s6 = inlined_call_operand.vmem [shape: f32[1,32], index: 6, kind: input, shape index: {}]   ;;  %s2181_s7 = inlined_call_operand.vmem [shape: f32[1,32], index: 7, kind: input, shape index: {}]   ;;  %s2182_s8 = inlined_call_operand.hbm [shape: bf16[32,64], index: 8, kind: input, shape index: {}]   ;;  %s2183_s9 = inlined_call_operand.vmem [shape: f32[1,64], index: 9, kind: input, shape index: {}]   ;;  %s2184_s10 = inlined_call_operand.vmem [shape: bf16[64,32], index: 10, kind: input, shape index: {}]   ;;  %s2185_s11 = inlined_call_operand.vmem [shape: f32[1,32], index: 11, kind: input, shape index: {}]   ;;  %s2186_s12 = inlined_call_operand.vmem [shape: f32[1,32], index: 12, kind: input, shape index: {}]   ;;  %s2187_s13 = inlined_call_operand.vmem [shape: f32[1,32], index: 13, kind: input, shape index: {}]   ;;  %s2188_s14 = inlined_call_operand.hbm [shape: f32[2,8,32], index: 14, kind: output, shape index: {}]  }
   0x1   :  { %20 = vsyncpa [#allocation5], 0  ;;  %s1797_s29 = smov [#allocation3]   ;;  %s1749_s17 = scalar_lea.hbm %s2182_s8, 256 }
   0x2   :  { %s42_s30 = sshll.u32 %s1797_s29, 4  ;;  %p1750_p0 = scmp.ne.s32.totalorder %s2182_s8, %s1749_s17  ;;  %s43_s30 = int_to_ptr.vmem [resolvable:$true] %s42_s30 }
   0x3   :  { %p1753_p1 = scmp.lt.u32.totalorder %s1749_s17, %s2182_s8 }
   0x5   :  { %p1755_p2 = pnand %p1753_p1, %p1750_p0 }
   0x7   :  { %1758 = shalt.err (!%p1755_p2)
}
   0x8   :  { %s1759_s22 = scalar_lea.vmem %s43_s30, 256  ;;  %p1764_p4 = scmp.lt.s32.totalorder %s43_s30, %s43_s30 }
   0x9   :  { %p1760_p3 = scmp.ne.s32.totalorder %s43_s30, %s1759_s22  ;;  %p1765_p5 = scmp.lt.s32.totalorder %s1759_s22, %s1759_s22 }
   0xb   :  { %p1766_p6 = por %p1765_p5, %p1764_p4 }
   0xd   :  { %p1767_p7 = pnand %p1766_p6, %p1760_p3 }
   0xf   :  { %1770 = shalt.err (!%p1767_p7)
}
  0x10   :  { %s1798_s23 = smov 64   ;;  %s1799_s24 = smov 4  }
  0x11   :  { %48 = dma.hbm_to_vmem [thread:$0]  %s2182_s8, 256, %s43_s30, [#allocation4], %s1798_s23, %s1798_s23, %s1799_s24  }
  0x12   :  { %1793 = dma.done.wait [#allocation4], 256  }
  0x13   :  { %1794 = vsyncadd [#allocation4], 4294967040  ;;  %v1800_v0 = vmov 0.0   ;;  %vm1801_vm0 = vmmov 0   ;;  %v1698_v1 = vld [vmem:[%s2176_s2] sm:$0xff]   ;;  %v1699_v2 = vld [vmem:[%s2176_s2 + $0x8] sm:$0xff]   ;;  %v154_v23 = vlaneseq }
  0x14   :  { %1546 = vmatprep.subr.bf16.mxu0 %v1800_v0  ;;  %1550 = vmatprep.mubr.msk.bf16.mxu0 %vm1801_vm0, %v1800_v0  ;;  %v1921_v3 = vld [vmem:[%s2174_s0] sm:$0xff]  ;;  %v1926_v4 = vld [vmem:[%s2174_s0 + $0x8] sm:$0xff]  ;;  %vm82_vm1 = vcmask 261120   ;;  %s1802_s0 = smov 96   ;;  %vm167_vm2 = vcmask 64512   ;;  %vm292_vm3 = vcmask 1043456  }
  0x15   :  { %1554 = vmatprep.subr.bf16.mxu1 %v1800_v0  ;;  %1556 = vmatprep.mubr.msk.bf16.mxu1 %vm1801_vm0, %v1800_v0  ;;  %v65_v5 = vpack.c.bf16 %v1926_v4, %v1921_v3  ;;  %v1444_v6 = vld [vmem:[%s2177_s3] ss:$0 sm:$0xff]  ;;  %v155_v24 = vshrl.u32 %v154_v23, 7  ;;  %v149_v28 = vld [vmem:[%s2175_s1 + $0x1] sm:$0x1]  ;;  %s1804_s22 = smov 120  }
  0x16   :  { %1547 = vmatpush3.bf16.msra.mxu0 %v1698_v1  ;;  %v148_v25 = vld [vmem:[%s2175_s1] sm:$0x1]  ;;  %v151_v30 = vmul.f32 -1e+09, %v149_v28  ;;  %s1803_s1 = smov 88   ;;  %vm386_vm4 = vcmask 60416  }
  0x17   :  { %1548 = vmatprep.subr.bf16.mxu0 %v1800_v0  ;;  %v150_v26 = vmul.f32 -1e+09, %v148_v25  ;;  %v156_v27 = vsub.s32 0, %v155_v24  ;;  %s1806_s24 = smov 80   ;;  %s1807_s25 = smov 112   ;;  %vm623_vm5 = vcmask 126016  }
  0x18   :  { %s1808_s26 = smov 48   ;;  %s1809_s27 = smov 72   ;;  %vm860_vm6 = vcmask 191616   ;;  %vm1097_vm7 = vcmask 257216   ;;  %vm1331_vm8 = vcmask 523264  }
  0x19   :  { %v1966_v29 = vrot.slane %v150_v26, %v156_v27  ;;  %v1969_v34 = vrot.slane %v151_v30, %v156_v27  ;;  %s1810_s28 = smov 104   ;;  %s1811_s29 = smov 40  }
  0x1a   :  { %1549 = vmatpush3.bf16.msra.mxu0 %v1699_v2  ;;  %s1812_s8 = smov 8   ;;  %s1813_s30 = smov 16  }
  0x1b   :  { %1560 = vmatprep.subr.bf16.mxu0 %v1800_v0  ;;  %s1814_s18 = smov 24   ;;  %s1815_s15 = smov [#allocation6]  }
  0x1c   :  { %s1429_s16 = sshll.u32 %s1815_s15, 4  ;;  %s1430_s16 = int_to_ptr.vmem [resolvable:$true] %s1429_s16 }
  0x1d   :  { %1551 = vmatmul.mubr.msk.bf16.vlgmr.msra.gmra.mrb[0].mxu0 %vm82_vm1, %v65_v5  ;;  %s1771_s17 = scalar_lea.vmem %s1430_s16, 256  ;;  %p1776_p9 = scmp.lt.s32.totalorder %s1430_s16, %s1430_s16 }
  0x1e   :  { %1562 = vmatprep.mubr.msk.bf16.mxu0 %vm1801_vm0, %v1800_v0  ;;  %p1772_p8 = scmp.ne.s32.totalorder %s1430_s16, %s1771_s17  ;;  %p1777_p10 = scmp.lt.s32.totalorder %s1771_s17, %s1771_s17 }
  0x20   :  { %p1778_p11 = por %p1777_p10, %p1776_p9 }
  0x22   :  { %p1779_p12 = pnand %p1778_p11, %p1772_p8 }
  0xf0   :  { %v120_v7 = vpop.f32.mrb[0].mxu0 }
  0xf1   :  { %v134_v8 = vadd.f32 %v1444_v6, %v120_v7  ;;  %v1552_v9 = vpop.f32.mrb[1].mxu0 }
  0xf2   :  { %v123_v10 = vpop.f32.mrb[2].mxu0 }
  0xf3   :  { %v1938_v11 = vpack.c.bf16 %v134_v8, %v134_v8  ;;  %v135_v12 = vadd.f32 %v1444_v6, %v123_v10  ;;  %v1553_v13 = vpop.f32.mrb[3].mxu0  ;;  %v136_v17 = vmul.f32 0.35355338, %v134_v8 }
  0xf5   :  { %165 = vrot.lane.b32.xlu0 %v1938_v11, %s1802_s0  ;;  %v1941_v14 = vpack.c.bf16 %v135_v12, %v135_v12  ;;  %v1947_v20 = vpack.c.bf16 %v136_v17, %v136_v17  ;;  %v137_v21 = vmul.f32 0.35355338, %v135_v12 }
  0xf7   :  { %v1954_v22 = vpack.c.bf16 %v137_v21, %v137_v21 }
  0xf9   :  { %215 = vrot.lane.b32.xlu0 %v1941_v14, %s1802_s0 }
 0x167   :  { %v166_v15 = vpop.permute.xlu0 %165 }
 0x168   :  { %v172_v16 = vsel %vm167_vm2, %v166_v15, 0 }
 0x169   :  { %1555 = vmatpush3.bf16.xpose.msra.mxu1 %v172_v16 }
 0x16a   :  { %1566 = vmatprep.subr.bf16.mxu1 %v1800_v0 }
 0x16b   :  { %v216_v18 = vpop.permute.xlu0 %215 }
 0x16c   :  { %v221_v19 = vsel %vm167_vm2, %v216_v18, 0 }
 0x16d   :  { %1561 = vmatpush3.bf16.xpose.msra.mxu0 %v221_v19 }
 0x16e   :  { %1572 = vmatprep.subr.bf16.mxu0 %v1800_v0 }
 0x170   :  { %1557 = vmatmul.mubr.msk.bf16.vlgmr.msra.gmra.mrb[0].mxu1 %vm167_vm2, %v1947_v20 }
 0x171   :  { %1568 = vmatprep.mubr.msk.bf16.mxu1 %vm1801_vm0, %v1800_v0 }
 0x174   :  { %1563 = vmatmul.mubr.msk.bf16.vlgmr.msra.gmra.mrb[4].mxu0 %vm167_vm2, %v1954_v22 }
 0x175   :  { %1574 = vmatprep.mubr.msk.bf16.mxu0 %vm1801_vm0, %v1800_v0 }
 0x243   :  { %v208_v31 = vpop.f32.mrb[0].mxu1 }
 0x244   :  { %v209_v32 = vadd.f32 %v208_v31, %v1966_v29  ;;  %v1558_v33 = vpop.f32.mrb[1].mxu1 }
 0x245   :  { %v211_v35 = vpop.f32.mrb[2].mxu1 }
 0x246   :  { %v1559_v36 = vpop.f32.mrb[3].mxu1  ;;  %v263_v37 = vsel %vm167_vm2, %v209_v32, -inf }
 0x247   :  { %264 = vmax.xlane.f32.xlu1 %v263_v37  ;;  %v257_v38 = vpop.f32.mrb[4].mxu0 }
 0x248   :  { %v258_v39 = vadd.f32 %v257_v38, %v1969_v34  ;;  %v1564_v40 = vpop.f32.mrb[5].mxu0 }
 0x249   :  { %v260_v41 = vpop.f32.mrb[6].mxu0 }
 0x24a   :  { %v1565_v42 = vpop.f32.mrb[7].mxu0  ;;  %v266_v43 = vsel %vm167_vm2, %v258_v39, -inf }
 0x24b   :  { %267 = vmax.xlane.f32.xlu1 %v266_v43 }
 0x25c   :  { %287 = vrot.lane.b32.xlu1 %v1938_v11, %s1798_s23 }
 0x260   :  { %336 = vrot.lane.b32.xlu1 %v1941_v14, %s1798_s23  ;;  %s1805_s23 = smov 56  }
 0x264   :  { %391 = vrot.lane.b32.xlu1 %v1938_v11, %s1803_s1 }
 0x2d4   :  { %v265_v44 = vpop.xlane.xlu1 %264 }
 0x2d5   :  { %v269_v45 = vsub.f32 %v209_v32, %v265_v44 }
 0x2d7   :  { %v271_v46 = vmul.f32 1.442695, %v269_v45 }
 0x2d8   :  { %v268_v47 = vpop.xlane.xlu1 %267 }
 0x2d9   :  { %1709 = vpow2.f32 %v271_v46  ;;  %v270_v48 = vsub.f32 %v258_v39, %v268_v47 }
 0x2db   :  { %v273_v49 = vmul.f32 1.442695, %v270_v48 }
 0x2dc   :  { %v288_v50 = vpop.permute.xlu1 %287 }
 0x2dd   :  { %1711 = vpow2.f32 %v273_v49  ;;  %v294_v51 = vsel %vm292_vm3, %v288_v50, 0 }
 0x2de   :  { %1567 = vmatpush3.bf16.msra.mxu1 %v294_v51 }
 0x2df   :  { %1578 = vmatprep.subr.bf16.mxu1 %v1800_v0 }
 0x2e0   :  { %v337_v52 = vpop.permute.xlu1 %336 }
 0x2e1   :  { %v342_v53 = vsel %vm292_vm3, %v337_v52, 0 }
 0x2e2   :  { %1573 = vmatpush3.bf16.msra.mxu0 %v342_v53 }
 0x2e3   :  { %v1710_v54 = vpop.eup %1709  ;;  %1584 = vmatprep.subr.bf16.mxu0 %v1800_v0 }
 0x2e4   :  { %v275_v55 = vsel %vm167_vm2, %v1710_v54, 0.0  ;;  %v392_v58 = vpop.permute.xlu1 %391 }
 0x2e5   :  { %276 = vadd.xlane.f32.xlu0 %v275_v55  ;;  %v397_v2 = vsel %vm167_vm2, %v392_v58, 0 }
 0x2e7   :  { %v1712_v56 = vpop.eup %1711 }
 0x2e8   :  { %v278_v57 = vsel %vm167_vm2, %v1712_v56, 0.0 }
 0x2e9   :  { %279 = vadd.xlane.f32.xlu1 %v278_v57 }
 0x2fa   :  { %441 = vrot.lane.b32.xlu1 %v1941_v14, %s1803_s1 }
 0x2fb   :  { %389 = vrot.lane.b32.xlu0 %v1947_v20, %s1804_s22 }
 0x2fe   :  { %439 = vrot.lane.b32.xlu1 %v1954_v22, %s1804_s22 }
 0x372   :  { %v277_v59 = vpop.xlane.xlu0 %276 }
 0x373   :  { %1713 = vrcp.f32 %v277_v59 }
 0x376   :  { %v280_v60 = vpop.xlane.xlu1 %279  ;;  %v390_v9 = vpop.permute.xlu0 %389 }
 0x377   :  { %1715 = vrcp.f32 %v280_v60 }
 0x37a   :  { %v442_v6 = vpop.permute.xlu1 %441 }
 0x37b   :  { %v447_v8 = vsel %vm167_vm2, %v442_v6, 0 }
 0x37d   :  { %v1714_v61 = vpop.eup %1713 }
 0x37e   :  { %v283_v62 = vmul.f32 %v1714_v61, %v1710_v54  ;;  %v440_v10 = vpop.permute.xlu1 %439 }
 0x380   :  { %v285_v63 = vpack.c.bf16 %v283_v62, %v283_v62 }
 0x381   :  { %v1716_v1 = vpop.eup %1715 }
 0x382   :  { %v284_v5 = vmul.f32 %v1716_v1, %v1712_v56  ;;  %1569 = vmatmul.mubr.msk.bf16.vlgmr.msra.gmra.mrb[4].mxu1 %vm167_vm2, %v285_v63 }
 0x383   :  { %1579 = vmatpush3.bf16.xpose.msra.mxu1 %v397_v2  ;;  %1580 = vmatprep.mubr.msk.bf16.mxu1 %vm1801_vm0, %v1800_v0 }
 0x384   :  { %v286_v7 = vpack.c.bf16 %v284_v5, %v284_v5  ;;  %1590 = vmatprep.subr.bf16.mxu1 %v1800_v0 }
 0x386   :  { %1575 = vmatmul.mubr.msk.bf16.vlgmr.msra.gmra.mrb[8].mxu0 %vm167_vm2, %v286_v7 }
 0x387   :  { %1585 = vmatpush3.bf16.xpose.msra.mxu0 %v447_v8  ;;  %1586 = vmatprep.mubr.msk.bf16.mxu0 %vm1801_vm0, %v1800_v0 }
 0x388   :  { %1596 = vmatprep.subr.bf16.mxu0 %v1800_v0 }
 0x38a   :  { %1581 = vmatmul.mubr.msk.bf16.vlgmr.msra.gmra.mrb[8].mxu1 %vm167_vm2, %v390_v9 }
 0x38b   :  { %1592 = vmatprep.mubr.msk.bf16.mxu1 %vm1801_vm0, %v1800_v0 }
 0x38e   :  { %1587 = vmatmul.mubr.msk.bf16.vlgmr.msra.gmra.mrb[12].mxu0 %vm167_vm2, %v440_v10 }
 0x38f   :  { %1598 = vmatprep.mubr.msk.bf16.mxu0 %vm1801_vm0, %v1800_v0 }
 0x455   :  { %v330_v12 = vpop.f32.mrb[4].mxu1 }
 0x456   :  { %v384_v13 = vpack.c.bf16 %v330_v12, %v330_v12  ;;  %v1570_v15 = vpop.f32.mrb[5].mxu1 }
 0x457   :  { %v333_v16 = vpop.f32.mrb[6].mxu1 }
 0x458   :  { %387 = vst.msk [vmem:[#allocation2] sm:$0xf] %vm386_vm4, %v384_v13  ;;  %v1571_v17 = vpop.f32.mrb[7].mxu1 }
 0x459   :  { %v378_v18 = vpop.f32.mrb[8].mxu0 }
 0x45a   :  { %v385_v19 = vpack.c.bf16 %v378_v18, %v378_v18  ;;  %v1576_v21 = vpop.f32.mrb[9].mxu0 }
 0x45b   :  { %v381_v23 = vpop.f32.mrb[10].mxu0 }
 0x45c   :  { %388 = vst.msk [vmem:[#allocation2 + $0x4] sm:$0xf] %vm386_vm4, %v385_v19  ;;  %v1577_v24 = vpop.f32.mrb[11].mxu0 }
 0x45d   :  { %v433_v25 = vpop.f32.mrb[8].mxu1 }
 0x45e   :  { %v434_v26 = vadd.f32 %v433_v25, %v1966_v29  ;;  %v1582_v27 = vpop.f32.mrb[9].mxu1 }
 0x45f   :  { %v436_v28 = vpop.f32.mrb[10].mxu1 }
 0x460   :  { %v1583_v30 = vpop.f32.mrb[11].mxu1  ;;  %v489_v31 = vsel %vm167_vm2, %v434_v26, -inf }
 0x461   :  { %490 = vmax.xlane.f32.xlu1 %v489_v31  ;;  %v483_v32 = vpop.f32.mrb[12].mxu0 }
 0x462   :  { %v484_v33 = vadd.f32 %v483_v32, %v1969_v34  ;;  %v1588_v35 = vpop.f32.mrb[13].mxu0 }
 0x463   :  { %v486_v36 = vpop.f32.mrb[14].mxu0 }
 0x464   :  { %v1589_v37 = vpop.f32.mrb[15].mxu0  ;;  %v492_v38 = vsel %vm167_vm2, %v484_v33, -inf }
 0x465   :  { %493 = vmax.xlane.f32.xlu0 %v492_v38 }
 0x472   :  { %513 = vrot.lane.b32.xlu1 %v1938_v11, %s1805_s23 }
 0x476   :  { %628 = vrot.lane.b32.xlu1 %v1938_v11, %s1806_s24 }
 0x47b   :  { %561 = vrot.lane.b32.xlu0 %v1941_v14, %s1805_s23 }
 0x47f   :  { %626 = vrot.lane.b32.xlu0 %v1947_v20, %s1807_s25 }
 0x4ee   :  { %v491_v39 = vpop.xlane.xlu1 %490 }
 0x4ef   :  { %v495_v40 = vsub.f32 %v434_v26, %v491_v39 }
 0x4f1   :  { %v497_v41 = vmul.f32 1.442695, %v495_v40 }
 0x4f2   :  { %v514_v42 = vpop.permute.xlu1 %513  ;;  %v494_v43 = vpop.xlane.xlu0 %493 }
 0x4f3   :  { %1717 = vpow2.f32 %v497_v41  ;;  %v519_v44 = vsel %vm292_vm3, %v514_v42, 0  ;;  %v496_v45 = vsub.f32 %v484_v33, %v494_v43 }
 0x4f4   :  { %1591 = vmatpush3.bf16.msra.mxu1 %v519_v44 }
 0x4f5   :  { %v499_v46 = vmul.f32 1.442695, %v496_v45  ;;  %1602 = vmatprep.subr.bf16.mxu1 %v1800_v0 }
 0x4f6   :  { %v562_v47 = vpop.permute.xlu0 %561  ;;  %v629_v53 = vpop.permute.xlu1 %628 }
 0x4f7   :  { %1719 = vpow2.f32 %v499_v46  ;;  %v567_v48 = vsel %vm292_vm3, %v562_v47, 0  ;;  %v634_v60 = vsel %vm167_vm2, %v629_v53, 0 }
 0x4f8   :  { %1597 = vmatpush3.bf16.msra.mxu0 %v567_v48 }
 0x4f9   :  { %1608 = vmatprep.subr.bf16.mxu0 %v1800_v0 }
 0x4fa   :  { %v627_v2 = vpop.permute.xlu0 %626 }
 0x4fd   :  { %v1718_v49 = vpop.eup %1717 }
 0x4fe   :  { %v501_v50 = vsel %vm167_vm2, %v1718_v49, 0.0 }
 0x4ff   :  { %502 = vadd.xlane.f32.xlu1 %v501_v50 }
 0x501   :  { %v1720_v51 = vpop.eup %1719 }
 0x502   :  { %v504_v52 = vsel %vm167_vm2, %v1720_v51, 0.0 }
 0x503   :  { %505 = vadd.xlane.f32.xlu1 %v504_v52 }
 0x514   :  { %678 = vrot.lane.b32.xlu1 %v1941_v14, %s1806_s24 }
 0x518   :  { %676 = vrot.lane.b32.xlu1 %v1954_v22, %s1807_s25 }
 0x58c   :  { %v503_v54 = vpop.xlane.xlu1 %502 }
 0x58d   :  { %1721 = vrcp.f32 %v503_v54 }
 0x590   :  { %v506_v55 = vpop.xlane.xlu1 %505 }
 0x591   :  { %1723 = vrcp.f32 %v506_v55 }
 0x594   :  { %v679_v62 = vpop.permute.xlu1 %678 }
 0x595   :  { %v684_v1 = vsel %vm167_vm2, %v679_v62, 0 }
 0x597   :  { %v1722_v56 = vpop.eup %1721 }
 0x598   :  { %v509_v57 = vmul.f32 %v1722_v56, %v1718_v49  ;;  %v677_v5 = vpop.permute.xlu1 %676 }
 0x59a   :  { %v511_v58 = vpack.c.bf16 %v509_v57, %v509_v57 }
 0x59b   :  { %v1724_v59 = vpop.eup %1723 }
 0x59c   :  { %v510_v61 = vmul.f32 %v1724_v59, %v1720_v51  ;;  %1593 = vmatmul.mubr.msk.bf16.vlgmr.msra.gmra.mrb[12].mxu1 %vm167_vm2, %v511_v58 }
 0x59d   :  { %1603 = vmatpush3.bf16.xpose.msra.mxu1 %v634_v60  ;;  %1604 = vmatprep.mubr.msk.bf16.mxu1 %vm1801_vm0, %v1800_v0 }
 0x59e   :  { %v512_v63 = vpack.c.bf16 %v510_v61, %v510_v61  ;;  %1614 = vmatprep.subr.bf16.mxu1 %v1800_v0 }
 0x5a0   :  { %1599 = vmatmul.mubr.msk.bf16.vlgmr.msra.gmra.mrb[16].mxu0 %vm167_vm2, %v512_v63 }
 0x5a1   :  { %1609 = vmatpush3.bf16.xpose.msra.mxu0 %v684_v1  ;;  %1610 = vmatprep.mubr.msk.bf16.mxu0 %vm1801_vm0, %v1800_v0 }
 0x5a2   :  { %1620 = vmatprep.subr.bf16.mxu0 %v1800_v0 }
 0x5a4   :  { %1605 = vmatmul.mubr.msk.bf16.vlgmr.msra.gmra.mrb[16].mxu1 %vm167_vm2, %v627_v2 }
 0x5a5   :  { %1616 = vmatprep.mubr.msk.bf16.mxu1 %vm1801_vm0, %v1800_v0 }
 0x5a8   :  { %1611 = vmatmul.mubr.msk.bf16.vlgmr.msra.gmra.mrb[20].mxu0 %vm167_vm2, %v677_v5 }
 0x5a9   :  { %1622 = vmatprep.mubr.msk.bf16.mxu0 %vm1801_vm0, %v1800_v0 }
 0x66f   :  { %v2036_v6 = vpop.f32.mrb[12].mxu1 }
 0x670   :  { %v1594_v7 = vpop.f32.mrb[13].mxu1 }
 0x671   :  { %v558_v8 = vpop.f32.mrb[14].mxu1 }
 0x672   :  { %v1595_v9 = vpop.f32.mrb[15].mxu1 }
 0x673   :  { %v2038_v10 = vpop.f32.mrb[16].mxu0 }
 0x674   :  { %v1600_v12 = vpop.f32.mrb[17].mxu0 }
 0x675   :  { %v606_v13 = vpop.f32.mrb[18].mxu0 }
 0x676   :  { %v1601_v15 = vpop.f32.mrb[19].mxu0 }
 0x677   :  { %v670_v16 = vpop.f32.mrb[16].mxu1 }
 0x678   :  { %v671_v17 = vadd.f32 %v670_v16, %v1966_v29  ;;  %v1606_v18 = vpop.f32.mrb[17].mxu1 }
 0x679   :  { %v673_v19 = vpop.f32.mrb[18].mxu1 }
 0x67a   :  { %v1607_v21 = vpop.f32.mrb[19].mxu1  ;;  %v726_v23 = vsel %vm167_vm2, %v671_v17, -inf }
 0x67b   :  { %727 = vmax.xlane.f32.xlu0 %v726_v23  ;;  %v720_v24 = vpop.f32.mrb[20].mxu0  ;;  %v1495_v23 = vpack.c.bf16 %v2038_v10, %v2038_v10 }
 0x67c   :  { %v721_v25 = vadd.f32 %v720_v24, %v1969_v34  ;;  %v1612_v26 = vpop.f32.mrb[21].mxu0 }
 0x67d   :  { %v723_v27 = vpop.f32.mrb[22].mxu0 }
 0x67e   :  { %v1613_v28 = vpop.f32.mrb[23].mxu0  ;;  %v729_v30 = vsel %vm167_vm2, %v721_v25, -inf }
 0x67f   :  { %730 = vmax.xlane.f32.xlu1 %v729_v30 }
 0x690   :  { %750 = vrot.lane.b32.xlu1 %v1938_v11, %s1808_s26 }
 0x694   :  { %865 = vrot.lane.b32.xlu1 %v1938_v11, %s1809_s27 }
 0x698   :  { %915 = vrot.lane.b32.xlu1 %v1941_v14, %s1809_s27 }
 0x69c   :  { %913 = vrot.lane.b32.xlu1 %v1954_v22, %s1810_s28 }
 0x708   :  { %v728_v31 = vpop.xlane.xlu0 %727 }
 0x709   :  { %v732_v32 = vsub.f32 %v671_v17, %v728_v31 }
 0x70b   :  { %v734_v33 = vmul.f32 1.442695, %v732_v32 }
 0x70c   :  { %v731_v35 = vpop.xlane.xlu1 %730 }
 0x70d   :  { %1725 = vpow2.f32 %v734_v33  ;;  %v733_v36 = vsub.f32 %v721_v25, %v731_v35 }
 0x70f   :  { %v736_v37 = vmul.f32 1.442695, %v733_v36 }
 0x710   :  { %v751_v38 = vpop.permute.xlu1 %750 }
 0x711   :  { %1727 = vpow2.f32 %v736_v37  ;;  %v756_v39 = vsel %vm292_vm3, %v751_v38, 0 }
 0x712   :  { %1615 = vmatpush3.bf16.msra.mxu1 %v756_v39 }
 0x713   :  { %1626 = vmatprep.subr.bf16.mxu1 %v1800_v0 }
 0x714   :  { %v866_v48 = vpop.permute.xlu1 %865 }
 0x715   :  { %v871_v52 = vsel %vm167_vm2, %v866_v48, 0  ;;  %v1700_v48 = vld [vmem:[%s2178_s4] sm:$0xff]  }
 0x717   :  { %v1726_v40 = vpop.eup %1725 }
 0x718   :  { %v738_v41 = vsel %vm167_vm2, %v1726_v40, 0.0 }
 0x719   :  { %739 = vadd.xlane.f32.xlu0 %v738_v41 }
 0x71b   :  { %v1728_v42 = vpop.eup %1727 }
 0x71c   :  { %v741_v22 = vsel %vm167_vm2, %v1728_v42, 0.0 }
 0x71d   :  { %742 = vadd.xlane.f32.xlu0 %v741_v22 }
 0x733   :  { %798 = vrot.lane.b32.xlu0 %v1941_v14, %s1808_s26 }
 0x737   :  { %863 = vrot.lane.b32.xlu0 %v1947_v20, %s1810_s28  ;;  %v916_v20 = vpop.permute.xlu1 %915 }
 0x738   :  { %v921_v55 = vsel %vm167_vm2, %v916_v20, 0 }
 0x73b   :  { %v914_v57 = vpop.permute.xlu1 %913 }
 0x7a6   :  { %v740_v43 = vpop.xlane.xlu0 %739 }
 0x7a7   :  { %1729 = vrcp.f32 %v740_v43 }
 0x7aa   :  { %v743_v44 = vpop.xlane.xlu0 %742 }
 0x7ab   :  { %1731 = vrcp.f32 %v743_v44 }
 0x7ae   :  { %v799_v45 = vpop.permute.xlu0 %798 }
 0x7af   :  { %v804_v46 = vsel %vm292_vm3, %v799_v45, 0 }
 0x7b0   :  { %1621 = vmatpush3.bf16.msra.mxu0 %v804_v46 }
 0x7b1   :  { %v1730_v47 = vpop.eup %1729  ;;  %1632 = vmatprep.subr.bf16.mxu0 %v1800_v0 }
 0x7b2   :  { %v746_v49 = vmul.f32 %v1730_v47, %v1726_v40  ;;  %v864_v56 = vpop.permute.xlu0 %863 }
 0x7b4   :  { %v748_v50 = vpack.c.bf16 %v746_v49, %v746_v49  ;;  %v1701_v49 = vld [vmem:[%s2178_s4 + $0x8] sm:$0xff]  }
 0x7b5   :  { %v1732_v51 = vpop.eup %1731 }
 0x7b6   :  { %v747_v53 = vmul.f32 %v1732_v51, %v1728_v42  ;;  %1617 = vmatmul.mubr.msk.bf16.vlgmr.msra.gmra.mrb[20].mxu1 %vm167_vm2, %v748_v50 }
 0x7b7   :  { %1627 = vmatpush3.bf16.xpose.msra.mxu1 %v871_v52  ;;  %1628 = vmatprep.mubr.msk.bf16.mxu1 %vm1801_vm0, %v1800_v0 }
 0x7b8   :  { %v749_v54 = vpack.c.bf16 %v747_v53, %v747_v53  ;;  %1638 = vmatprep.subr.bf16.mxu1 %v1800_v0 }
 0x7ba   :  { %1623 = vmatmul.mubr.msk.bf16.vlgmr.msra.gmra.mrb[24].mxu0 %vm167_vm2, %v749_v54 }
 0x7bb   :  { %1633 = vmatpush3.bf16.xpose.msra.mxu0 %v921_v55  ;;  %1634 = vmatprep.mubr.msk.bf16.mxu0 %vm1801_vm0, %v1800_v0 }
 0x7bc   :  { %1644 = vmatprep.subr.bf16.mxu0 %v1800_v0 }
 0x7be   :  { %1629 = vmatmul.mubr.msk.bf16.vlgmr.msra.gmra.mrb[24].mxu1 %vm167_vm2, %v864_v56 }
 0x7bf   :  { %1640 = vmatprep.mubr.msk.bf16.mxu1 %vm1801_vm0, %v1800_v0 }
 0x7c2   :  { %1635 = vmatmul.mubr.msk.bf16.vlgmr.msra.gmra.mrb[28].mxu0 %vm167_vm2, %v914_v57 }
 0x7c3   :  { %1646 = vmatprep.mubr.msk.bf16.mxu0 %vm1801_vm0, %v1800_v0 }
 0x889   :  { %v792_v58 = vpop.f32.mrb[20].mxu1 }
 0x88a   :  { %v1618_v59 = vpop.f32.mrb[21].mxu1  ;;  %v1496_v38 = vpack.c.bf16 %v792_v58, %v792_v58 }
 0x88b   :  { %v795_v60 = vpop.f32.mrb[22].mxu1 }
 0x88c   :  { %v1619_v61 = vpop.f32.mrb[23].mxu1 }
 0x88d   :  { %v840_v62 = vpop.f32.mrb[24].mxu0 }
 0x88e   :  { %v1624_v63 = vpop.f32.mrb[25].mxu0 }
 0x88f   :  { %v843_v1 = vpop.f32.mrb[26].mxu0 }
 0x890   :  { %v1625_v2 = vpop.f32.mrb[27].mxu0 }
 0x891   :  { %v907_v5 = vpop.f32.mrb[24].mxu1 }
 0x892   :  { %v908_v7 = vadd.f32 %v907_v5, %v1966_v29  ;;  %v1630_v8 = vpop.f32.mrb[25].mxu1  ;;  %v1494_v29 = vpack.c.bf16 %v2036_v6, %v2036_v6 }
 0x893   :  { %v910_v9 = vpop.f32.mrb[26].mxu1 }
 0x894   :  { %v1631_v12 = vpop.f32.mrb[27].mxu1  ;;  %v963_v13 = vsel %vm167_vm2, %v908_v7, -inf }
 0x895   :  { %964 = vmax.xlane.f32.xlu0 %v963_v13  ;;  %v957_v15 = vpop.f32.mrb[28].mxu0 }
 0x896   :  { %v958_v16 = vadd.f32 %v957_v15, %v1969_v34  ;;  %v1636_v17 = vpop.f32.mrb[29].mxu0  ;;  %v1497_v34 = vpack.c.bf16 %v840_v62, %v840_v62  ;;  %v1471_v62 = vld [vmem:[%s2179_s5] ss:$0 sm:$0xff] }
 0x897   :  { %v960_v18 = vpop.f32.mrb[30].mxu0 }
 0x898   :  { %v1637_v19 = vpop.f32.mrb[31].mxu0  ;;  %v966_v21 = vsel %vm167_vm2, %v958_v16, -inf }
 0x899   :  { %967 = vmax.xlane.f32.xlu1 %v966_v21 }
 0x8aa   :  { %987 = vrot.lane.b32.xlu1 %v1938_v11, %s1811_s29 }
 0x8ae   :  { %617 = vrot.lane.b32.xlu1 %v1494_v29, %s1812_s8 }
 0x8b2   :  { %619 = vrot.lane.b32.xlu1 %v1495_v23, %s1812_s8 }
 0x8b6   :  { %856 = vrot.lane.b32.xlu1 %v1497_v34, %s1813_s30 }
 0x922   :  { %v965_v24 = vpop.xlane.xlu0 %964 }
 0x923   :  { %v969_v25 = vsub.f32 %v908_v7, %v965_v24 }
 0x925   :  { %v971_v26 = vmul.f32 1.442695, %v969_v25  ;;  %v1703_v25 = vld [vmem:[#allocation3] sm:$0xff]  }
 0x926   :  { %v968_v27 = vpop.xlane.xlu1 %967 }
 0x927   :  { %1733 = vpow2.f32 %v971_v26  ;;  %v970_v11 = vsub.f32 %v958_v16, %v968_v27  ;;  %v1705_v26 = vld [vmem:[%s2184_s10] sm:$0xff]   ;;  %v1706_v27 = vld [vmem:[%s2184_s10 + $0x8] sm:$0xff]  }
 0x929   :  { %v973_v28 = vmul.f32 1.442695, %v970_v11 }
 0x92a   :  { %v988_v30 = vpop.permute.xlu1 %987 }
 0x92b   :  { %1735 = vpow2.f32 %v973_v28  ;;  %v993_v6 = vsel %vm292_vm3, %v988_v30, 0 }
 0x92c   :  { %1639 = vmatpush3.bf16.msra.mxu1 %v993_v6 }
 0x92d   :  { %1650 = vmatprep.subr.bf16.mxu1 %v1800_v0 }
 0x92e   :  { %v618_v10 = vpop.permute.xlu1 %617 }
 0x92f   :  { %624 = vst.msk [vmem:[#allocation2] sm:$0xf] %vm623_vm5, %v618_v10 }
 0x931   :  { %v1734_v31 = vpop.eup %1733 }
 0x932   :  { %v620_v32 = vpop.permute.xlu1 %619  ;;  %v975_v33 = vsel %vm167_vm2, %v1734_v31, 0.0 }
 0x933   :  { %625 = vst.msk [vmem:[#allocation2 + $0x4] sm:$0xf] %vm623_vm5, %v620_v32  ;;  %976 = vadd.xlane.f32.xlu0 %v975_v33 }
 0x935   :  { %v1736_v35 = vpop.eup %1735 }
 0x936   :  { %v857_v36 = vpop.permute.xlu1 %856  ;;  %v978_v37 = vsel %vm167_vm2, %v1736_v35, 0.0 }
 0x937   :  { %862 = vst.msk [vmem:[#allocation2 + $0x4] sm:$0xf] %vm860_vm6, %v857_v36  ;;  %979 = vadd.xlane.f32.xlu0 %v978_v37 }
 0x94d   :  { %1035 = vrot.lane.b32.xlu0 %v1941_v14, %s1811_s29 }
 0x951   :  { %854 = vrot.lane.b32.xlu0 %v1496_v38, %s1813_s30 }
 0x9c0   :  { %v977_v39 = vpop.xlane.xlu0 %976 }
 0x9c1   :  { %1737 = vrcp.f32 %v977_v39  ;;  %v1477_v39 = vld [vmem:[%s2181_s7] ss:$0 sm:$0xff] }
 0x9c4   :  { %v980_v40 = vpop.xlane.xlu0 %979 }
 0x9c5   :  { %1739 = vrcp.f32 %v980_v40 }
 0x9c8   :  { %v1036_v41 = vpop.permute.xlu0 %1035 }
 0x9c9   :  { %v1041_v42 = vsel %vm292_vm3, %v1036_v41, 0 }
 0x9ca   :  { %1645 = vmatpush3.bf16.msra.mxu0 %v1041_v42 }
 0x9cb   :  { %v1738_v22 = vpop.eup %1737  ;;  %1658 = vmatprep.subr.bf16.mxu0 %v1800_v0 }
 0x9cc   :  { %v983_v43 = vmul.f32 %v1738_v22, %v1734_v31  ;;  %v855_v44 = vpop.permute.xlu0 %854 }
 0x9cd   :  { %861 = vst.msk [vmem:[#allocation2] sm:$0xf] %vm860_vm6, %v855_v44  ;;  %v1708_v44 = vld [vmem:[%s2184_s10 + $0x18] sm:$0xff]  }
 0x9ce   :  { %v985_v45 = vpack.c.bf16 %v983_v43, %v983_v43  ;;  %v1707_v43 = vld [vmem:[%s2184_s10 + $0x10] sm:$0xff]  }
 0x9cf   :  { %v1740_v46 = vpop.eup %1739 }
 0x9d0   :  { %v984_v14 = vmul.f32 %v1740_v46, %v1736_v35  ;;  %1641 = vmatmul.mubr.msk.bf16.vlgmr.msra.gmra.mrb[28].mxu1 %vm167_vm2, %v985_v45  ;;  %v1476_v35 = vld [vmem:[%s2180_s6] ss:$0 sm:$0xff] }
 0x9d1   :  { %1654 = vmatprep.mubr.msk.bf16.mxu1 %vm1801_vm0, %v1800_v0  ;;  %1651 = vmatpush3.bf16.msra.mxu1 %v1700_v48  ;;  %v1478_v45 = vld [vmem:[%s2183_s9] ss:$0 sm:$0xff] }
 0x9d2   :  { %v986_v47 = vpack.c.bf16 %v984_v14, %v984_v14  ;;  %1652 = vmatprep.subr.bf16.mxu1 %v1800_v0 }
 0x9d4   :  { %1647 = vmatmul.mubr.msk.bf16.vlgmr.msra.gmra.mrb[32].mxu0 %vm167_vm2, %v986_v47 }
 0x9d5   :  { %1662 = vmatprep.mubr.msk.bf16.mxu0 %vm1801_vm0, %v1800_v0  ;;  %1653 = vmatpush3.bf16.msra.mxu1 %v1701_v49 }
 0x9d6   :  { %1666 = vmatprep.subr.bf16.mxu1 %v1800_v0  ;;  %1659 = vmatpush3.bf16.msra.mxu0 %v1703_v25  ;;  %v1489_v25 = vld [vmem:[%s2187_s13] ss:$0 sm:$0xff] }
 0x9d7   :  { %1660 = vmatprep.subr.bf16.mxu0 %v1800_v0 }
 0xaa3   :  { %v1029_v50 = vpop.f32.mrb[28].mxu1 }
 0xaa4   :  { %v1498_v51 = vpack.c.bf16 %v1029_v50, %v1029_v50  ;;  %v1642_v52 = vpop.f32.mrb[29].mxu1 }
 0xaa5   :  { %v1032_v53 = vpop.f32.mrb[30].mxu1 }
 0xaa6   :  { %1091 = vrot.lane.b32.xlu0 %v1498_v51, %s1814_s18  ;;  %v1643_v20 = vpop.f32.mrb[31].mxu1 }
 0xaa7   :  { %v1077_v54 = vpop.f32.mrb[32].mxu0 }
 0xaa8   :  { %v1499_v55 = vpack.c.bf16 %v1077_v54, %v1077_v54  ;;  %v1648_v56 = vpop.f32.mrb[33].mxu0 }
 0xaa9   :  { %v1080_v57 = vpop.f32.mrb[34].mxu0 }
 0xaaa   :  { %1093 = vrot.lane.b32.xlu1 %v1499_v55, %s1814_s18  ;;  %v1649_v58 = vpop.f32.mrb[35].mxu0 }
 0xb18   :  { %v1092_v59 = vpop.permute.xlu0 %1091 }
 0xb19   :  { %1098 = vst.msk [vmem:[#allocation2] sm:$0xf] %vm1097_vm7, %v1092_v59 }
 0xb1c   :  { %v1094_v60 = vpop.permute.xlu1 %1093 }
 0xb1d   :  { %1099 = vst.msk [vmem:[#allocation2 + $0x4] sm:$0xf] %vm1097_vm7, %v1094_v60 }
 0xb24   :  { %v1702_v61 = vld [vmem:[#allocation2] sm:$0xff]  }
 0xb25   :  { %1655 = vmatmul.mubr.msk.bf16.vlgmr.msra.gmra.mrb[32].mxu1 %vm82_vm1, %v1702_v61 }
 0xb26   :  { %1674 = vmatprep.mubr.msk.bf16.mxu1 %vm1801_vm0, %v1800_v0  ;;  %1667 = vmatpush3.bf16.msra.mxu1 %v1705_v26 }
 0xb27   :  { %1668 = vmatprep.subr.bf16.mxu1 %v1800_v0 }
 0xb2a   :  { %1669 = vmatpush3.bf16.msra.mxu1 %v1706_v27 }
 0xb2b   :  { %1670 = vmatprep.subr.bf16.mxu1 %v1800_v0 }
 0xb2e   :  { %1671 = vmatpush3.bf16.msra.mxu1 %v1707_v43 }
 0xb2f   :  { %1672 = vmatprep.subr.bf16.mxu1 %v1800_v0  ;;  %v1482_v0 = vld [vmem:[%s2185_s11] ss:$0 sm:$0xff] }
 0xb32   :  { %1673 = vmatpush3.bf16.msra.mxu1 %v1708_v44 }
 0xbf8   :  { %v1167_v63 = vpop.f32.mrb[32].mxu1 }
 0xbf9   :  { %v1168_v1 = vadd.f32 %v1471_v62, %v1167_v63  ;;  %v1656_v2 = vpop.f32.mrb[33].mxu1 }
 0xbfa   :  { %v1170_v5 = vpop.f32.mrb[34].mxu1 }
 0xbfb   :  { %v1171_v7 = vadd.f32 %v1471_v62, %v1170_v5  ;;  %v1657_v8 = vpop.f32.mrb[35].mxu1  ;;  %v1174_v9 = vadd.f32 %v1168_v1, %v1921_v3 }
 0xbfd   :  { %v1178_v12 = vsel %vm82_vm1, %v1174_v9, 0.0  ;;  %v1175_v13 = vadd.f32 %v1171_v7, %v1926_v4  ;;  %v1704_v4 = vld [vmem:[#allocation3 + $0x8] sm:$0xff]  }
 0xbfe   :  { %1179 = vadd.xlane.f32.xlu0 %v1178_v12  ;;  %1661 = vmatpush3.bf16.msra.mxu0 %v1704_v4 }
 0xbff   :  { %v1181_v15 = vsel %vm82_vm1, %v1175_v13, 0.0 }
 0xc00   :  { %1182 = vadd.xlane.f32.xlu1 %v1181_v15 }
 0xc8b   :  { %v1180_v16 = vpop.xlane.xlu0 %1179 }
 0xc8c   :  { %v1185_v17 = vmul.f32 0.03125, %v1180_v16 }
 0xc8d   :  { %v1183_v18 = vpop.xlane.xlu1 %1182 }
 0xc8e   :  { %v1187_v19 = vsub.f32 %v1174_v9, %v1185_v17  ;;  %v1186_v21 = vmul.f32 0.03125, %v1183_v18 }
 0xc90   :  { %v1188_v29 = vsub.f32 %v1175_v13, %v1186_v21  ;;  %v1189_v23 = vmul.f32 %v1187_v19, %v1187_v19 }
 0xc92   :  { %v1191_v34 = vsel %vm82_vm1, %v1189_v23, 0.0  ;;  %v1190_v24 = vmul.f32 %v1188_v29, %v1188_v29 }
 0xc93   :  { %1192 = vadd.xlane.f32.xlu0 %v1191_v34  ;;  %v1488_v34 = vld [vmem:[%s2186_s12] ss:$0 sm:$0xff] }
 0xc94   :  { %v1194_v3 = vsel %vm82_vm1, %v1190_v24, 0.0 }
 0xc97   :  { %1195 = vadd.xlane.f32.xlu0 %v1194_v3 }
 0xd20   :  { %v1193_v11 = vpop.xlane.xlu0 %1192 }
 0xd21   :  { %v1197_v28 = vmul.f32 0.03125, %v1193_v11 }
 0xd23   :  { %v1199_v30 = vadd.f32 1e-06, %v1197_v28 }
 0xd24   :  { %v1196_v6 = vpop.xlane.xlu0 %1195 }
 0xd25   :  { %1741 = vrsqrt.f32 %v1199_v30  ;;  %v1198_v10 = vmul.f32 0.03125, %v1196_v6 }
 0xd27   :  { %v1200_v31 = vadd.f32 1e-06, %v1198_v10 }
 0xd29   :  { %1743 = vrsqrt.f32 %v1200_v31 }
 0xd2f   :  { %v1742_v32 = vpop.eup %1741 }
 0xd30   :  { %v1203_v33 = vmul.f32 %v1742_v32, %v1187_v19 }
 0xd32   :  { %v1211_v37 = vmul.f32 %v1476_v35, %v1203_v33 }
 0xd33   :  { %v1744_v36 = vpop.eup %1743 }
 0xd34   :  { %v1204_v38 = vmul.f32 %v1744_v36, %v1188_v29  ;;  %v1219_v41 = vadd.f32 %v1477_v39, %v1211_v37 }
 0xd36   :  { %v1212_v40 = vmul.f32 %v1476_v35, %v1204_v38 }
 0xd38   :  { %v1220_v42 = vadd.f32 %v1477_v39, %v1212_v40 }
 0xd3a   :  { %v1221_v22 = vpack.c.bf16 %v1220_v42, %v1219_v41 }
 0xd3c   :  { %1663 = vmatmul.mubr.msk.bf16.vlgmr.msra.gmra.mrb[36].mxu0 %vm82_vm1, %v1221_v22 }
 0xe0f   :  { %v1282_v46 = vpop.f32.mrb[36].mxu0 }
 0xe10   :  { %v1283_v14 = vadd.f32 %v1478_v45, %v1282_v46  ;;  %v1664_v47 = vpop.f32.mrb[37].mxu0 }
 0xe11   :  { %v1285_v48 = vpop.f32.mrb[38].mxu0 }
 0xe12   :  { %v1286_v49 = vadd.f32 %v1478_v45, %v1285_v48  ;;  %v1665_v50 = vpop.f32.mrb[39].mxu0  ;;  %v1289_v51 = vmax.f32 %v1283_v14, 0.0 }
 0xe14   :  { %v1290_v52 = vmax.f32 %v1286_v49, 0.0 }
 0xe16   :  { %v1291_v53 = vpack.c.bf16 %v1290_v52, %v1289_v51 }
 0xe18   :  { %1675 = vmatmul.mubr.msk.bf16.vlgmr.msra.gmra.mrb[36].mxu1 %vm1331_vm8, %v1291_v53 }
 0xeeb   :  { %v1369_v20 = vpop.f32.mrb[36].mxu1 }
 0xeec   :  { %v1370_v54 = vadd.f32 %v1482_v0, %v1369_v20  ;;  %v1676_v55 = vpop.f32.mrb[37].mxu1 }
 0xeed   :  { %v1372_v56 = vpop.f32.mrb[38].mxu1 }
 0xeee   :  { %v1373_v57 = vadd.f32 %v1482_v0, %v1372_v56  ;;  %v1677_v58 = vpop.f32.mrb[39].mxu1  ;;  %v1376_v59 = vadd.f32 %v1370_v54, %v1219_v41 }
 0xef0   :  { %v1380_v60 = vsel %vm82_vm1, %v1376_v59, 0.0  ;;  %v1377_v61 = vadd.f32 %v1373_v57, %v1220_v42 }
 0xef1   :  { %1381 = vadd.xlane.f32.xlu1 %v1380_v60 }
 0xef2   :  { %v1383_v62 = vsel %vm82_vm1, %v1377_v61, 0.0 }
 0xef3   :  { %1384 = vadd.xlane.f32.xlu0 %v1383_v62 }
 0xf7e   :  { %v1382_v63 = vpop.xlane.xlu1 %1381 }
 0xf7f   :  { %v1386_v1 = vmul.f32 0.03125, %v1382_v63 }
 0xf80   :  { %v1385_v2 = vpop.xlane.xlu0 %1384 }
 0xf81   :  { %v1388_v5 = vsub.f32 %v1376_v59, %v1386_v1  ;;  %v1387_v7 = vmul.f32 0.03125, %v1385_v2 }
 0xf83   :  { %v1389_v8 = vsub.f32 %v1377_v61, %v1387_v7  ;;  %v1390_v9 = vmul.f32 %v1388_v5, %v1388_v5 }
 0xf85   :  { %v1392_v12 = vsel %vm82_vm1, %v1390_v9, 0.0  ;;  %v1391_v13 = vmul.f32 %v1389_v8, %v1389_v8 }
 0xf86   :  { %1393 = vadd.xlane.f32.xlu1 %v1392_v12 }
 0xf87   :  { %v1395_v15 = vsel %vm82_vm1, %v1391_v13, 0.0 }
 0xf88   :  { %1396 = vadd.xlane.f32.xlu0 %v1395_v15 }
0x1013   :  { %v1394_v16 = vpop.xlane.xlu1 %1393 }
0x1014   :  { %v1398_v17 = vmul.f32 0.03125, %v1394_v16 }
0x1015   :  { %v1397_v18 = vpop.xlane.xlu0 %1396 }
0x1016   :  { %v1400_v19 = vadd.f32 1e-06, %v1398_v17  ;;  %v1399_v21 = vmul.f32 0.03125, %v1397_v18 }
0x1018   :  { %1745 = vrsqrt.f32 %v1400_v19  ;;  %v1401_v29 = vadd.f32 1e-06, %v1399_v21 }
0x101a   :  { %1747 = vrsqrt.f32 %v1401_v29 }
0x1022   :  { %v1746_v23 = vpop.eup %1745 }
0x1023   :  { %v1404_v24 = vmul.f32 %v1746_v23, %v1388_v5 }
0x1024   :  { %v1748_v3 = vpop.eup %1747 }
0x1025   :  { %v1412_v4 = vmul.f32 %v1488_v34, %v1404_v24  ;;  %v1405_v26 = vmul.f32 %v1748_v3, %v1389_v8 }
0x1027   :  { %v1413_v27 = vmul.f32 %v1488_v34, %v1405_v26  ;;  %v1420_v11 = vadd.f32 %v1489_v25, %v1412_v4 }
0x1029   :  { %v1421_v28 = vadd.f32 %v1489_v25, %v1413_v27  ;;  %1422 = vst.msk [vmem:[#allocation6] sm:$0xff] %vm82_vm1, %v1420_v11 }
0x102b   :  { %1423 = vst.msk [vmem:[#allocation6 + $0x8] sm:$0xff] %vm82_vm1, %v1421_v28 }
0x102c   :  { %1782 = shalt.err (!%p1779_p12)
}
0x102d   :  { %s1783_s2 = scalar_lea.hbm %s2188_s14, 256 }
0x102e   :  { %p1784_p13 = scmp.ne.s32.totalorder %s2188_s14, %s1783_s2  ;;  %p1787_p0 = scmp.lt.u32.totalorder %s1783_s2, %s2188_s14 }
0x1030   :  { %p1789_p1 = pnand %p1787_p0, %p1784_p13 }
0x1032   :  { %1792 = shalt.err (!%p1789_p1)
}
0x1033   :  { %s1816_s3 = smov 128  }
0x1034   :  { %1435 = dma.vmem_to_hbm [thread:$0]  %s1430_s16, 256, %s2188_s14, [#allocation5], %s1816_s3, %s1816_s3, %s1812_s8  }
0x1035   :  { %1795 = dma.done.wait [#allocation5], 256  }
0x1036   :  { %1796 = vsyncadd [#allocation5], 4294967040 }
0x1037   :  { %1439 = vsyncpa [#allocation4], 1 }
0x1038   :  { %1440 = vsyncpa [#allocation5], 1 }

</bundles_post_ra>
